<compile_context>
chip_gen: v7x
topology: tpu7x:2x2x1
jax: 0.10.0
libtpu: 0.0.40
codegen_flags: <defaults>
</compile_context>

<pallas_src>
import jax
import jax.numpy as jnp
from jax.experimental import pallas as pl
from jax.experimental.pallas import tpu as pltpu

C_IN_GATE = 12    # conv2d11 input channels
C = 104           # channel width (conv2d11 out, conv2d12 in/out, BN)
H = W = 28
N = 1
P = H * W         # 784 pixels (N=1)
BN_EPS = 1e-5


def _fused_kernel(x31_ref, w1t_ref, b1_ref, x29_ref, w2_ref,
                  gamma_ref, beta_ref, o_ref):
    # --- relu + 1x1 conv (12 -> 104) + sigmoid : SE-style gate row ----------
    # Kept off the MXU (a 1-pixel projection is pure VPU/XLU work).
    g = jnp.maximum(x31_ref[...], 0.0)                            # [12, 1]
    gate = jnp.sum(w1t_ref[...] * g, axis=0, keepdims=True) \
        + b1_ref[...]                                             # [1, C]
    gate = jax.nn.sigmoid(gate)                                   # [1, C]

    # --- fold gate into conv2d12's input-channel (column) axis --------------
    # (W2 * gate_row) @ x29 == W2 @ (gate * x29): scale the 104x104 weight
    # instead of the 104x784 feature map.
    w2g = w2_ref[...] * gate                                      # [C, C]

    # --- 1x1 conv (104 -> 104, no bias) == channel matmul on the MXU --------
    x36 = jnp.dot(w2g, x29_ref[...],
                  preferred_element_type=jnp.float32)             # [C, P]

    # --- BatchNorm2d, training mode (biased variance), one-pass stats -------
    inv_p = jnp.float32(1.0 / P)                  # explicit /P, never /padded
    s = jnp.sum(x36, axis=1, keepdims=True)                       # [C, 1]
    sq = jnp.sum(x36 * x36, axis=1, keepdims=True)                # [C, 1]
    mean = s * inv_p
    var = jnp.maximum(sq * inv_p - mean * mean, 0.0)
    inv = jax.lax.rsqrt(var + BN_EPS)                             # [C, 1]
    scale = inv * gamma_ref[...]                                  # [C, 1]
    shift = beta_ref[...] - mean * scale                          # [C, 1]
    o_ref[...] = x36 * scale + shift


@jax.jit
def fused_forward(x31, x29, w1, b1, w2, gamma, beta):
    """x31: [N, 12, 1, 1] NCHW ; x29: [N, 104, H, W] NCHW (N == 1).
    Returns [N, 104, H, W] NCHW (same convention as the PyTorch output)."""
    n, c, h, w = x29.shape
    p = h * w  # n == 1

    # Zero-copy layout plumbing: NCHW with N=1 is already [C, H*W].
    x29_mat = x29.reshape(c, p)                      # [C, P]
    x31_col = x31.reshape(C_IN_GATE, 1)              # [12, 1]

    # conv weights: PyTorch [C_out, C_in, 1, 1]
    w1_t = w1.reshape(C, C_IN_GATE).T                # [12, 104] tiny one-time T
    w2_mat = w2.reshape(C, C)                        # [104, 104] (no transpose)

    b1_row = b1.reshape(1, C)
    gamma_col = gamma.reshape(C, 1)
    beta_col = beta.reshape(C, 1)

    vmem = pl.BlockSpec(memory_space=pltpu.MemorySpace.VMEM)
    out_mat = pl.pallas_call(
        _fused_kernel,
        out_shape=jax.ShapeDtypeStruct((c, p), jnp.float32),
        in_specs=[vmem] * 7,
        out_specs=vmem,
    )(x31_col, w1_t, b1_row, x29_mat, w2_mat, gamma_col, beta_col)

    # [C, P] -> NCHW, zero-copy reshape.
    return out_mat.reshape(n, c, h, w)


def _reference(x31, x29, w1, b1, w2, gamma, beta):
    """Plain-JAX reference of the same forward (training-mode BN)."""
    g = jnp.maximum(x31.reshape(1, C_IN_GATE), 0.0)
    gate = jax.nn.sigmoid(g @ w1.reshape(C, C_IN_GATE).T + b1)   # [1, C]
    x35 = x29 * gate.reshape(1, C, 1, 1)
    x36 = jnp.einsum('nchw,kc->nkhw', x35, w2.reshape(C, C))
    mean = jnp.mean(x36, axis=(0, 2, 3), keepdims=True)
    var = jnp.mean((x36 - mean) ** 2, axis=(0, 2, 3), keepdims=True)
    return (x36 - mean) * jax.lax.rsqrt(var + BN_EPS) \
        * gamma.reshape(1, C, 1, 1) + beta.reshape(1, C, 1, 1)


if __name__ == "__main__":
    key = jax.random.PRNGKey(0)
    k1, k2, k3, k4, k5, k6, k7 = jax.random.split(key, 7)

    # inputs (shapes fixed by the module's channel counts)
    x31 = jax.random.normal(k1, (N, C_IN_GATE, 1, 1), jnp.float32)
    x29 = jax.random.normal(k2, (N, C, H, W), jnp.float32)

    # deterministic parameter init (synthetic, not a checkpoint)
    w1 = jax.random.normal(k3, (C, C_IN_GATE, 1, 1), jnp.float32) * 0.1
    b1 = jax.random.normal(k4, (C,), jnp.float32) * 0.1
    w2 = jax.random.normal(k5, (C, C, 1, 1), jnp.float32) * 0.1
    gamma = 1.0 + 0.1 * jax.random.normal(k6, (C,), jnp.float32)
    beta = 0.1 * jax.random.normal(k7, (C,), jnp.float32)

    # TODO(synk): PyTorch training-mode BN also updates running_mean/var as a
    # side effect; only the returned tensor is reproduced here.
    out = fused_forward(x31, x29, w1, b1, w2, gamma, beta)
    out = jax.block_until_ready(out)

    ref = _reference(x31, x29, w1, b1, w2, gamma, beta)
    assert out.shape == (N, C, H, W)
    assert jnp.allclose(out, ref, atol=1e-4, rtol=1e-4)

    print("KERNEL_OK")
</pallas_src>

<mosaic_0001>
module attributes {stable_mosaic.version = 11 : i64} {
  func.func @_fused_kernel(%arg0: memref<12x1xf32, #tpu.memory_space<vmem>>, %arg1: memref<12x104xf32, #tpu.memory_space<vmem>>, %arg2: memref<1x104xf32, #tpu.memory_space<vmem>>, %arg3: memref<104x784xf32, #tpu.memory_space<vmem>>, %arg4: memref<104x104xf32, #tpu.memory_space<vmem>>, %arg5: memref<104x1xf32, #tpu.memory_space<vmem>>, %arg6: memref<104x1xf32, #tpu.memory_space<vmem>>, %arg7: memref<104x784xf32, #tpu.memory_space<vmem>>) attributes {dimension_semantics = [], scalar_prefetch = 0 : i64, scratch_operands = 0 : i64, tpu.core_type = #tpu.core_type<tc>} {
    %c0 = arith.constant 0 : index
    %c0_0 = arith.constant 0 : index
    %0 = vector.load %arg0[%c0, %c0_0] : memref<12x1xf32, #tpu.memory_space<vmem>>, vector<12x1xf32>
    %cst = arith.constant 0.000000e+00 : f32
    %1 = vector.broadcast %cst : f32 to vector<12x1xf32>
    %2 = arith.maximumf %0, %1 : vector<12x1xf32>
    %c0_1 = arith.constant 0 : index
    %c0_2 = arith.constant 0 : index
    %3 = vector.load %arg1[%c0_1, %c0_2] : memref<12x104xf32, #tpu.memory_space<vmem>>, vector<12x104xf32>
    %4 = vector.broadcast %2 : vector<12x1xf32> to vector<12x104xf32>
    %5 = arith.mulf %3, %4 : vector<12x104xf32>
    %cst_3 = arith.constant dense<0.000000e+00> : vector<104xf32>
    %6 = vector.multi_reduction <add>, %5, %cst_3 [0] : vector<12x104xf32> to vector<104xf32>
    %7 = vector.shape_cast %6 : vector<104xf32> to vector<1x104xf32>
    %c0_4 = arith.constant 0 : index
    %c0_5 = arith.constant 0 : index
    %8 = vector.load %arg2[%c0_4, %c0_5] : memref<1x104xf32, #tpu.memory_space<vmem>>, vector<1x104xf32>
    %9 = arith.addf %7, %8 : vector<1x104xf32>
    %10 = arith.negf %9 : vector<1x104xf32>
    %11 = math.exp %10 : vector<1x104xf32>
    %cst_6 = arith.constant 1.000000e+00 : f32
    %12 = vector.broadcast %cst_6 : f32 to vector<1x104xf32>
    %13 = arith.addf %12, %11 : vector<1x104xf32>
    %14 = arith.divf %12, %13 : vector<1x104xf32>
    %c0_7 = arith.constant 0 : index
    %c0_8 = arith.constant 0 : index
    %15 = vector.load %arg4[%c0_7, %c0_8] : memref<104x104xf32, #tpu.memory_space<vmem>>, vector<104x104xf32>
    %16 = vector.broadcast %14 : vector<1x104xf32> to vector<104x104xf32>
    %17 = arith.mulf %15, %16 : vector<104x104xf32>
    %c0_9 = arith.constant 0 : index
    %c0_10 = arith.constant 0 : index
    %18 = vector.load %arg3[%c0_9, %c0_10] : memref<104x784xf32, #tpu.memory_space<vmem>>, vector<104x784xf32>
    %cst_11 = arith.constant dense<0.000000e+00> : vector<104x784xf32>
    %19 = tpu.matmul %17, %18, %cst_11 {dimension_numbers = #tpu.dot_dimension_numbers<[1], [0], [0], [1], [0, 0, 1, 1], [], []>} : vector<104x104xf32>, vector<104x784xf32>, vector<104x784xf32> -> vector<104x784xf32>
    %cst_12 = arith.constant dense<0.000000e+00> : vector<104xf32>
    %20 = vector.multi_reduction <add>, %19, %cst_12 [1] : vector<104x784xf32> to vector<104xf32>
    %21 = vector.shape_cast %20 : vector<104xf32> to vector<104x1xf32>
    %22 = arith.mulf %19, %19 : vector<104x784xf32>
    %cst_13 = arith.constant dense<0.000000e+00> : vector<104xf32>
    %23 = vector.multi_reduction <add>, %22, %cst_13 [1] : vector<104x784xf32> to vector<104xf32>
    %24 = vector.shape_cast %23 : vector<104xf32> to vector<104x1xf32>
    %cst_14 = arith.constant 0.00127551018 : f32
    %25 = vector.broadcast %cst_14 : f32 to vector<104x1xf32>
    %26 = arith.mulf %21, %25 : vector<104x1xf32>
    %cst_15 = arith.constant 0.00127551018 : f32
    %27 = vector.broadcast %cst_15 : f32 to vector<104x1xf32>
    %28 = arith.mulf %24, %27 : vector<104x1xf32>
    %29 = arith.mulf %26, %26 : vector<104x1xf32>
    %30 = arith.subf %28, %29 : vector<104x1xf32>
    %cst_16 = arith.constant 0.000000e+00 : f32
    %31 = vector.broadcast %cst_16 : f32 to vector<104x1xf32>
    %32 = arith.maximumf %30, %31 : vector<104x1xf32>
    %cst_17 = arith.constant 9.99999974E-6 : f32
    %33 = vector.broadcast %cst_17 : f32 to vector<104x1xf32>
    %34 = arith.addf %32, %33 : vector<104x1xf32>
    %35 = math.rsqrt %34 : vector<104x1xf32>
    %c0_18 = arith.constant 0 : index
    %c0_19 = arith.constant 0 : index
    %36 = vector.load %arg5[%c0_18, %c0_19] : memref<104x1xf32, #tpu.memory_space<vmem>>, vector<104x1xf32>
    %37 = arith.mulf %35, %36 : vector<104x1xf32>
    %c0_20 = arith.constant 0 : index
    %c0_21 = arith.constant 0 : index
    %38 = vector.load %arg6[%c0_20, %c0_21] : memref<104x1xf32, #tpu.memory_space<vmem>>, vector<104x1xf32>
    %39 = arith.mulf %26, %37 : vector<104x1xf32>
    %40 = arith.subf %38, %39 : vector<104x1xf32>
    %41 = vector.broadcast %37 : vector<104x1xf32> to vector<104x784xf32>
    %42 = arith.mulf %19, %41 : vector<104x784xf32>
    %43 = vector.broadcast %40 : vector<104x1xf32> to vector<104x784xf32>
    %44 = arith.addf %42, %43 : vector<104x784xf32>
    %c0_22 = arith.constant 0 : index
    %c0_23 = arith.constant 0 : index
    %45 = vector.load %arg7[%c0_22, %c0_23] : memref<104x784xf32, #tpu.memory_space<vmem>>, vector<104x784xf32>
    tpu.vector_store %arg7[%c0_22, %c0_23], %44 {strides = array<i32>} : memref<104x784xf32, #tpu.memory_space<vmem>>, vector<104x784xf32>,
    return
  }
}

</mosaic_0001>

<bundles_post_ra>
// kernel: fused_forward.1
= control target key start
LH: loop header
LB: loop body
LE: loop exit
PB: predicated region body
PF: predicated region fallthrough
CT: control target
= control target key end

     0   :  { %v1941_v0 = vmov 0   ;;  %vm44_vm0 = vcmask 850944   ;;  %vm46_vm1 = vcmask 846848   ;;  %vm1944_vm2 = vmmov 0   ;;  %s3565_s0 = inlined_call_operand.vmem [shape: f32[12,1], index: 0, kind: input, shape index: {}]   ;;  %s3566_s3 = inlined_call_operand.vmem [shape: f32[104,784], index: 3, kind: input, shape index: {}]   ;;  %s3567_s1 = inlined_call_operand.vmem [shape: f32[12,104], index: 1, kind: input, shape index: {}]   ;;  %s3568_s2 = inlined_call_operand.vmem [shape: f32[1,104], index: 2, kind: input, shape index: {}]   ;;  %s3569_s4 = inlined_call_operand.vmem [shape: f32[104,104], index: 4, kind: input, shape index: {}]   ;;  %s3570_s5 = inlined_call_operand.vmem [shape: f32[104,1], index: 5, kind: input, shape index: {}]   ;;  %s3571_s6 = inlined_call_operand.vmem [shape: f32[104,1], index: 6, kind: input, shape index: {}]   ;;  %s3572_s7 = inlined_call_operand.vmem [shape: f32[104,784], index: 7, kind: output, shape index: {}]  }
   0x1   :  { %1909 = vset.pattern.permute.xlu0 %v1941_v0  ;;  %v26_v1 = vld [vmem:[%s3565_s0] sm:$0xff]  ;;  %v27_v2 = vld [vmem:[%s3565_s0 + $0x8] sm:$0xf]  ;;  %1910 = vset.pattern.permute.xlu1 %v1941_v0  ;;  %v96_v7 = vld [vmem:[%s3566_s3 + $0x18] sm:$0xff]  ;;  %vm787_vm3 = vcmask 130048  }
   0x2   :  { %v28_v3 = vmax.f32 %v26_v1, 0.0  ;;  %v29_v4 = vmax.f32 %v27_v2, 0.0  ;;  %v94_v5 = vld [vmem:[%s3566_s3 + $0x8] sm:$0xff]  ;;  %v101_v6 = vld [vmem:[%s3566_s3 + $0x40] sm:$0xff]  ;;  %v100_v10 = vld [vmem:[%s3566_s3 + $0x38] sm:$0xff] }
   0x3   :  { %v1815_v8 = vpack.c.bf16 %v101_v6, %v94_v5  ;;  %v93_v9 = vld [vmem:[%s3566_s3] sm:$0xff]  ;;  %v103_v11 = vld [vmem:[%s3566_s3 + $0x50] sm:$0xff]  ;;  %v102_v15 = vld [vmem:[%s3566_s3 + $0x48] sm:$0xff] }
   0x4   :  { %34 = vperm.xlu0 %1909, %v28_v3   ;;  %v1817_v12 = vpack.c.bf16 %v100_v10, %v93_v9  ;;  %v1839_v13 = vpack.c.bf16 %v103_v11, %v96_v7  ;;  %v95_v14 = vld [vmem:[%s3566_s3 + $0x10] sm:$0xff]  ;;  %v108_v17 = vld [vmem:[%s3566_s3 + $0x78] sm:$0xff]  ;;  %v110_v19 = vld [vmem:[%s3566_s3 + $0x88] sm:$0xff] }
   0x5   :  { %1816 = vmatprep.subr.bf16.mxu0 %v1815_v8  ;;  %v1841_v16 = vpack.c.bf16 %v102_v15, %v95_v14  ;;  %v115_v18 = vld [vmem:[%s3566_s3 + $0xb0] sm:$0xff]  ;;  %v114_v22 = vld [vmem:[%s3566_s3 + $0xa8] sm:$0xff]  ;;  %v117_v23 = vld [vmem:[%s3566_s3 + $0xc0] sm:$0xff] }
   0x6   :  { %1818 = vmatpush1.bf16.msra.mxu0 %v1817_v12  ;;  %1840 = vmatprep.subr.bf16.mxu1 %v1839_v13  ;;  %v1819_v20 = vpack.c.bf16 %v115_v18, %v108_v17  ;;  %v107_v21 = vld [vmem:[%s3566_s3 + $0x70] sm:$0xff]  ;;  %v1843_v25 = vpack.c.bf16 %v117_v23, %v110_v19  ;;  %v109_v26 = vld [vmem:[%s3566_s3 + $0x80] sm:$0xff]  ;;  %v116_v27 = vld [vmem:[%s3566_s3 + $0xb8] sm:$0xff]  ;;  %v1942_v19 = vmov 0.0  }
   0x7   :  { %1842 = vmatpush1.bf16.msra.mxu1 %v1841_v16  ;;  %v1821_v24 = vpack.c.bf16 %v114_v22, %v107_v21  ;;  %v1845_v28 = vpack.c.bf16 %v116_v27, %v109_v26  ;;  %v122_v29 = vld [vmem:[%s3566_s3 + $0xe8] sm:$0xff]  ;;  %v129_v30 = vld [vmem:[%s3566_s3 + $0x120] sm:$0xff]  ;;  %v124_v31 = vld [vmem:[%s3566_s3 + $0xf8] sm:$0xff]  ;;  %287 = vmatprep.mubr.f32.mxu0 %v1942_v19  ;;  %v1943_v21 = vmov 0.0|0.0  }
   0x8   :  { %39 = vperm.xlu0 %1909, %v29_v4   ;;  %1820 = vmatprep.subr.bf16.mxu0 %v1819_v20  ;;  %v1823_v32 = vpack.c.bf16 %v129_v30, %v122_v29  ;;  %v121_v33 = vld [vmem:[%s3566_s3 + $0xe0] sm:$0xff]  ;;  %v128_v34 = vld [vmem:[%s3566_s3 + $0x118] sm:$0xff]  ;;  %v131_v35 = vld [vmem:[%s3566_s3 + $0x130] sm:$0xff] }
   0x9   :  { %1844 = vmatprep.subr.bf16.mxu1 %v1843_v25  ;;  %v1825_v36 = vpack.c.bf16 %v128_v34, %v121_v33  ;;  %v1847_v37 = vpack.c.bf16 %v131_v35, %v124_v31  ;;  %v123_v38 = vld [vmem:[%s3566_s3 + $0xf0] sm:$0xff]  ;;  %v130_v39 = vld [vmem:[%s3566_s3 + $0x128] sm:$0xff]  ;;  %v136_v41 = vld [vmem:[%s3566_s3 + $0x158] sm:$0xff]  ;;  %430 = vmatprep.mubr.f32.mxu1 %v1942_v19 }
   0xa   :  { %1822 = vmatpush1.bf16.msra.mxu0 %v1821_v24  ;;  %v1849_v40 = vpack.c.bf16 %v130_v39, %v123_v38  ;;  %v143_v42 = vld [vmem:[%s3566_s3 + $0x190] sm:$0xff]  ;;  %v138_v43 = vld [vmem:[%s3566_s3 + $0x168] sm:$0xff]  ;;  %v145_v47 = vld [vmem:[%s3566_s3 + $0x1a0] sm:$0xff] }
   0xb   :  { %1846 = vmatpush1.bf16.msra.mxu1 %v1845_v28  ;;  %1824 = vmatprep.subr.bf16.mxu0 %v1823_v32  ;;  %v1827_v44 = vpack.c.bf16 %v143_v42, %v136_v41  ;;  %v135_v45 = vld [vmem:[%s3566_s3 + $0x150] sm:$0xff]  ;;  %v142_v46 = vld [vmem:[%s3566_s3 + $0x188] sm:$0xff]  ;;  %v1851_v49 = vpack.c.bf16 %v145_v47, %v138_v43  ;;  %v137_v50 = vld [vmem:[%s3566_s3 + $0x160] sm:$0xff]  ;;  %v76_v42 = vlaneseq }
   0xc   :  { %1848 = vmatprep.subr.bf16.mxu1 %v1847_v37  ;;  %v1829_v48 = vpack.c.bf16 %v142_v46, %v135_v45  ;;  %v144_v51 = vld [vmem:[%s3566_s3 + $0x198] sm:$0xff]  ;;  %v150_v53 = vld [vmem:[%s3566_s3 + $0x1c8] sm:$0xff]  ;;  %v157_v54 = vld [vmem:[%s3566_s3 + $0x200] sm:$0xff] }
   0xd   :  { %v1853_v52 = vpack.c.bf16 %v144_v51, %v137_v50  ;;  %v152_v55 = vld [vmem:[%s3566_s3 + $0x1d8] sm:$0xff]  ;;  %v1831_v56 = vpack.c.bf16 %v157_v54, %v150_v53  ;;  %v149_v57 = vld [vmem:[%s3566_s3 + $0x1c0] sm:$0xff]  ;;  %v159_v59 = vld [vmem:[%s3566_s3 + $0x210] sm:$0xff]  ;;  %v77_v43 = vshrl.u32 %v76_v42, 7 }
   0xe   :  { %1826 = vmatpush1.bf16.msra.mxu0 %v1825_v36  ;;  %v156_v58 = vld [vmem:[%s3566_s3 + $0x1f8] sm:$0xff]  ;;  %v1855_v61 = vpack.c.bf16 %v159_v59, %v152_v55  ;;  %v151_v62 = vld [vmem:[%s3566_s3 + $0x1d0] sm:$0xff]  ;;  %v158_v63 = vld [vmem:[%s3566_s3 + $0x208] sm:$0xff] }
   0xf   :  { %1850 = vmatpush1.bf16.msra.mxu1 %v1849_v40  ;;  %1828 = vmatprep.subr.bf16.mxu0 %v1827_v44  ;;  %v1833_v60 = vpack.c.bf16 %v156_v58, %v149_v57  ;;  %v1857_v0 = vpack.c.bf16 %v158_v63, %v151_v62  ;;  %v164_v1 = vld [vmem:[%s3566_s3 + $0x238] sm:$0xff]  ;;  %v171_v2 = vld [vmem:[%s3566_s3 + $0x270] sm:$0xff]  ;;  %v166_v3 = vld [vmem:[%s3566_s3 + $0x248] sm:$0xff]  ;;  %v78_v44 = vsub.s32 0, %v77_v43 }
  0x10   :  { %1852 = vmatprep.subr.bf16.mxu1 %v1851_v49  ;;  %v1835_v4 = vpack.c.bf16 %v171_v2, %v164_v1  ;;  %v163_v5 = vld [vmem:[%s3566_s3 + $0x230] sm:$0xff]  ;;  %v170_v6 = vld [vmem:[%s3566_s3 + $0x268] sm:$0xff]  ;;  %v173_v7 = vld [vmem:[%s3566_s3 + $0x280] sm:$0xff] }
  0x11   :  { %v1837_v8 = vpack.c.bf16 %v170_v6, %v163_v5  ;;  %v1859_v9 = vpack.c.bf16 %v173_v7, %v166_v3  ;;  %v165_v10 = vld [vmem:[%s3566_s3 + $0x240] sm:$0xff]  ;;  %v172_v11 = vld [vmem:[%s3566_s3 + $0x278] sm:$0xff]  ;;  %v178_v13 = vld [vmem:[%s3566_s3 + $0x2a8] sm:$0xff] }
  0x12   :  { %1830 = vmatpush1.bf16.msra.mxu0 %v1829_v48  ;;  %v1861_v12 = vpack.c.bf16 %v172_v11, %v165_v10  ;;  %v177_v14 = vld [vmem:[%s3566_s3 + $0x2a0] sm:$0xff]  ;;  %v180_v15 = vld [vmem:[%s3566_s3 + $0x2b8] sm:$0xff]  ;;  %v179_v16 = vld [vmem:[%s3566_s3 + $0x2b0] sm:$0xff] }
  0x13   :  { %1854 = vmatpush1.bf16.msra.mxu1 %v1853_v52  ;;  %1832 = vmatprep.subr.bf16.mxu0 %v1831_v56  ;;  %v98_v17 = vld [vmem:[%s3566_s3 + $0x28] sm:$0xff]  ;;  %v105_v18 = vld [vmem:[%s3566_s3 + $0x60] sm:$0xff]  ;;  %v104_v46 = vld [vmem:[%s3566_s3 + $0x58] sm:$0xff] }
  0x14   :  { %1856 = vmatprep.subr.bf16.mxu1 %v1855_v61  ;;  %v1863_v20 = vpack.c.bf16 %v105_v18, %v98_v17  ;;  %v30_v22 = vld [vmem:[%s3567_s1] sm:$0xff]  ;;  %v31_v24 = vld [vmem:[%s3567_s1 + $0x8] sm:$0xf]  ;;  %v99_v49 = vld [vmem:[%s3566_s3 + $0x30] sm:$0xff] }
  0x15   :  { %v55_v36 = vld [vmem:[%s3568_s2] sm:$0x1]  ;;  %v106_v50 = vld [vmem:[%s3566_s3 + $0x68] sm:$0xff]  ;;  %v112_v52 = vld [vmem:[%s3566_s3 + $0x98] sm:$0xff] }
  0x16   :  { %1834 = vmatpush1.bf16.msra.mxu0 %v1833_v60  ;;  %v97_v45 = vld [vmem:[%s3566_s3 + $0x20] sm:$0xff]  ;;  %v119_v53 = vld [vmem:[%s3566_s3 + $0xd0] sm:$0xff]  ;;  %v1888_v56 = vpack.c.bf16 %v106_v50, %v99_v49  ;;  %v64_v57 = vld [vmem:[%s3569_s4 + $0x8] sm:$0xff] }
  0x17   :  { %1858 = vmatpush1.bf16.msra.mxu1 %v1857_v0  ;;  %1836 = vmatprep.subr.bf16.mxu0 %v1835_v4  ;;  %v63_v48 = vld [vmem:[%s3569_s4] sm:$0xff]  ;;  %v1865_v54 = vpack.c.bf16 %v104_v46, %v97_v45  ;;  %v111_v58 = vld [vmem:[%s3566_s3 + $0x90] sm:$0xff]  ;;  %v1867_v59 = vpack.c.bf16 %v119_v53, %v112_v52  ;;  %v118_v60 = vld [vmem:[%s3566_s3 + $0xc8] sm:$0xff] }
  0x18   :  { %1860 = vmatprep.subr.bf16.mxu1 %v1859_v9  ;;  %v113_v61 = vld [vmem:[%s3566_s3 + $0xa0] sm:$0xff]  ;;  %v120_v62 = vld [vmem:[%s3566_s3 + $0xd8] sm:$0xff]  ;;  %v126_v63 = vld [vmem:[%s3566_s3 + $0x108] sm:$0xff]  ;;  %v1869_v3 = vpack.c.bf16 %v118_v60, %v111_v58 }
  0x19   :  { %v133_v0 = vld [vmem:[%s3566_s3 + $0x140] sm:$0xff]  ;;  %v65_v2 = vld [vmem:[%s3569_s4 + $0x10] sm:$0xff]  ;;  %v1891_v4 = vpack.c.bf16 %v120_v62, %v113_v61  ;;  %v132_v7 = vld [vmem:[%s3566_s3 + $0x138] sm:$0xff] }
  0x1a   :  { %1838 = vmatpush1.bf16.msra.mxu0 %v1837_v8  ;;  %v125_v5 = vld [vmem:[%s3566_s3 + $0x100] sm:$0xff]  ;;  %v1871_v6 = vpack.c.bf16 %v133_v0, %v126_v63  ;;  %v127_v8 = vld [vmem:[%s3566_s3 + $0x110] sm:$0xff]  ;;  %v134_v9 = vld [vmem:[%s3566_s3 + $0x148] sm:$0xff] }
  0x1b   :  { %1862 = vmatpush1.bf16.msra.mxu1 %v1861_v12  ;;  %247 = vmatprep.subr.mxu0 %v178_v13  ;;  %v140_v10 = vld [vmem:[%s3566_s3 + $0x178] sm:$0xff]  ;;  %v147_v11 = vld [vmem:[%s3566_s3 + $0x1b0] sm:$0xff]  ;;  %v146_v18 = vld [vmem:[%s3566_s3 + $0x1a8] sm:$0xff] }
  0x1c   :  { %390 = vmatprep.subr.mxu1 %v180_v15  ;;  %v66_v13 = vld [vmem:[%s3569_s4 + $0x18] sm:$0xff]  ;;  %v1894_v15 = vpack.c.bf16 %v134_v9, %v127_v8  ;;  %v1875_v17 = vpack.c.bf16 %v147_v11, %v140_v10  ;;  %v174_v42 = vld [vmem:[%s3566_s3 + $0x288] sm:$0xff]  ;;  %v169_v43 = vld [vmem:[%s3566_s3 + $0x260] sm:$0xff] }
  0x1d   :  { %v182_v49 = vld [vmem:[%s3566_s3 + $0x2c8] sm:$0xff]  ;;  %v181_v52 = vld [vmem:[%s3566_s3 + $0x2c0] sm:$0xff]  ;;  %v183_v53 = vld [vmem:[%s3566_s3 + $0x2d0] sm:$0xff] }
  0x1e   :  { %248 = vmatpush1.msra.mxu0 %v177_v14  ;;  %v1873_v14 = vpack.c.bf16 %v132_v7, %v125_v5  ;;  %v72_v58 = vld [vmem:[%s3569_s4 + $0x48] sm:$0xff]  ;;  %v73_v60 = vld [vmem:[%s3569_s4 + $0x50] sm:$0xff]  ;;  %v74_v62 = vld [vmem:[%s3569_s4 + $0x58] sm:$0xff] }
  0x1f   :  { %391 = vmatpush1.msra.mxu1 %v179_v16  ;;  %1864 = vmatprep.subr.bf16.mxu0 %v1863_v20  ;;  %v139_v16 = vld [vmem:[%s3566_s3 + $0x170] sm:$0xff]  ;;  %v141_v20 = vld [vmem:[%s3566_s3 + $0x180] sm:$0xff] }
  0x20   :  { %1887 = vmatprep.subr.bf16.mxu1 %v1943_v21  ;;  %v75_v0 = vld [vmem:[%s3569_s4 + $0x60] sm:$0xff] }
  0x83   :  { %v35_v23 = vpop.permute.xlu0 %34 }
  0x84   :  { %v42_v25 = vmul.f32 %v35_v23, %v30_v22  ;;  %v148_v22 = vld [vmem:[%s3566_s3 + $0x1b8] sm:$0xff]  ;;  %v154_v23 = vld [vmem:[%s3566_s3 + $0x1e8] sm:$0xff] }
  0x86   :  { %v45_v28 = vsel %vm44_vm0, %v42_v25, 0.0 }
  0x87   :  { %v40_v26 = vpop.permute.xlu0 %39 }
  0x88   :  { %v43_v27 = vmul.f32 %v40_v26, %v31_v24  ;;  %v161_v24 = vld [vmem:[%s3566_s3 + $0x220] sm:$0xff] }
  0x89   :  { %v67_v26 = vld [vmem:[%s3569_s4 + $0x20] sm:$0xff] }
  0x8a   :  { %v47_v29 = vsel %vm46_vm1, %v43_v27, 0.0  ;;  %v1877_v27 = vpack.c.bf16 %v146_v18, %v139_v16 }
  0x8b   :  { %v48_v30 = vadd.f32 %v47_v29, %v45_v28  ;;  %v1897_v28 = vpack.c.bf16 %v148_v22, %v141_v20  ;;  %v153_v29 = vld [vmem:[%s3566_s3 + $0x1e0] sm:$0xff] }
  0x8d   :  { %v49_v31 = vrot.slane %v48_v30, 4 }
  0x8f   :  { %v50_v32 = vadd.f32 %v49_v31, %v48_v30  ;;  %v1879_v30 = vpack.c.bf16 %v161_v24, %v154_v23  ;;  %v160_v31 = vld [vmem:[%s3566_s3 + $0x218] sm:$0xff] }
  0x91   :  { %v51_v33 = vrot.slane %v50_v32, 2 }
  0x93   :  { %v52_v34 = vadd.f32 %v51_v33, %v50_v32  ;;  %v155_v32 = vld [vmem:[%s3566_s3 + $0x1f0] sm:$0xff]  ;;  %v162_v33 = vld [vmem:[%s3566_s3 + $0x228] sm:$0xff] }
  0x95   :  { %v53_v35 = vrot.slane %v52_v34, 1 }
  0x97   :  { %v54_v37 = vadd.f32 %v53_v35, %v52_v34  ;;  %v168_v34 = vld [vmem:[%s3566_s3 + $0x258] sm:$0xff]  ;;  %v175_v35 = vld [vmem:[%s3566_s3 + $0x290] sm:$0xff] }
  0x99   :  { %v56_v38 = vadd.f32 %v55_v36, %v54_v37  ;;  %v68_v37 = vld [vmem:[%s3569_s4 + $0x28] sm:$0xff] }
  0x9b   :  { %v1671_v39 = vmul.f32 -1.442695, %v56_v38  ;;  %v1881_v38 = vpack.c.bf16 %v160_v31, %v153_v29 }
  0x9d   :  { %1911 = vpow2.f32 %v1671_v39  ;;  %v1900_v39 = vpack.c.bf16 %v162_v33, %v155_v32 }
  0xa7   :  { %v1912_v40 = vpop.eup %1911 }
  0xa8   :  { %v60_v41 = vadd.f32 1.0, %v1912_v40  ;;  %v167_v40 = vld [vmem:[%s3566_s3 + $0x250] sm:$0xff] }
  0xa9   :  { %v1885_v46 = vpack.c.bf16 %v174_v42, %v167_v40 }
  0xaa   :  { %1913 = vrcp.f32 %v60_v41  ;;  %v1883_v41 = vpack.c.bf16 %v175_v35, %v168_v34 }
  0xb4   :  { %v1914_v47 = vpop.eup %1913 }
  0xb5   :  { %v2181_v51 = vrot.slane %v1914_v47, %v78_v44  ;;  %v176_v44 = vld [vmem:[%s3566_s3 + $0x298] sm:$0xff] }
  0xb6   :  { %v1903_v47 = vpack.c.bf16 %v176_v44, %v169_v43 }
  0xb7   :  { %v2190_v55 = vmul.f32 %v2181_v51, %v63_v48  ;;  %v2220_v1 = vmul.f32 %v2181_v51, %v64_v57  ;;  %v2251_v12 = vmul.f32 %v2181_v51, %v65_v2  ;;  %v2282_v25 = vmul.f32 %v2181_v51, %v66_v13  ;;  %v69_v48 = vld [vmem:[%s3569_s4 + $0x30] sm:$0xff] }
  0xb8   :  { %v2313_v36 = vmul.f32 %v2181_v51, %v67_v26  ;;  %v2338_v45 = vmul.f32 %v2181_v51, %v68_v37  ;;  %v2354_v50 = vmul.f32 %v2181_v51, %v69_v48  ;;  %v90_v61 = vmul.f32 %v2181_v51, %v73_v60 }
  0xb9   :  { %1672 = vmatmul.mubr.msk.f32.vlgmr.msra.gmra.mrb[0].mxu0 %vm44_vm0, %v2190_v55  ;;  %1685 = vmatmul.mubr.msk.f32.vlgmr.msra.gmra.mrb[0].mxu1 %vm44_vm0, %v2190_v55  ;;  %v91_v63 = vmul.f32 %v2181_v51, %v74_v62  ;;  %v92_v2 = vmul.f32 %v2181_v51, %v75_v0 }
  0xba   :  { %1866 = vmatpush1.bf16.msra.mxu0 %v1865_v54  ;;  %293 = vmatprep.mubr.f32.mxu0 %v1942_v19 }
  0xbb   :  { %436 = vmatprep.mubr.f32.mxu1 %v1942_v19  ;;  %1889 = vmatpush3.bf16.msra.mxu1 %v1888_v56  ;;  %v71_v56 = vld [vmem:[%s3569_s4 + $0x40] sm:$0xff] }
  0xbc   :  { %1868 = vmatprep.subr.bf16.mxu0 %v1867_v59  ;;  %1890 = vmatprep.subr.bf16.mxu1 %v1943_v21  ;;  %v2385_v57 = vmul.f32 %v2181_v51, %v71_v56  ;;  %v89_v59 = vmul.f32 %v2181_v51, %v72_v58 }
  0xbd   :  { %1673 = vmatmul.mubr.msk.f32.gmra.mrb[2].mxu0 %vm44_vm0, %v2220_v1  ;;  %1686 = vmatmul.mubr.msk.f32.gmra.mrb[2].mxu1 %vm44_vm0, %v2220_v1 }
  0xbe   :  { %299 = vmatprep.mubr.f32.mxu0 %v1942_v19  ;;  %442 = vmatprep.mubr.f32.mxu1 %v1942_v19 }
  0xbf   :  { %1870 = vmatpush1.bf16.msra.mxu0 %v1869_v3  ;;  %1892 = vmatpush3.bf16.msra.mxu1 %v1891_v4 }
  0xc0   :  { %1872 = vmatprep.subr.bf16.mxu0 %v1871_v6  ;;  %1893 = vmatprep.subr.bf16.mxu1 %v1943_v21 }
  0xc1   :  { %1674 = vmatmul.mubr.msk.f32.gmra.mrb[4].mxu0 %vm44_vm0, %v2251_v12  ;;  %1687 = vmatmul.mubr.msk.f32.gmra.mrb[4].mxu1 %vm44_vm0, %v2251_v12 }
  0xc2   :  { %305 = vmatprep.mubr.f32.mxu0 %v1942_v19  ;;  %448 = vmatprep.mubr.f32.mxu1 %v1942_v19 }
  0xc3   :  { %1874 = vmatpush1.bf16.msra.mxu0 %v1873_v14  ;;  %1895 = vmatpush3.bf16.msra.mxu1 %v1894_v15 }
  0xc4   :  { %1876 = vmatprep.subr.bf16.mxu0 %v1875_v17  ;;  %1896 = vmatprep.subr.bf16.mxu1 %v1943_v21 }
  0xc5   :  { %1675 = vmatmul.mubr.msk.f32.gmra.mrb[6].mxu0 %vm44_vm0, %v2282_v25  ;;  %1688 = vmatmul.mubr.msk.f32.gmra.mrb[6].mxu1 %vm44_vm0, %v2282_v25 }
  0xc6   :  { %311 = vmatprep.mubr.f32.mxu0 %v1942_v19  ;;  %454 = vmatprep.mubr.f32.mxu1 %v1942_v19 }
  0xc7   :  { %1878 = vmatpush1.bf16.msra.mxu0 %v1877_v27  ;;  %1898 = vmatpush3.bf16.msra.mxu1 %v1897_v28 }
  0xc8   :  { %1880 = vmatprep.subr.bf16.mxu0 %v1879_v30  ;;  %1899 = vmatprep.subr.bf16.mxu1 %v1943_v21 }
  0xc9   :  { %1676 = vmatmul.mubr.msk.f32.gmra.mrb[8].mxu0 %vm44_vm0, %v2313_v36  ;;  %1689 = vmatmul.mubr.msk.f32.gmra.mrb[8].mxu1 %vm44_vm0, %v2313_v36 }
  0xca   :  { %317 = vmatprep.mubr.f32.mxu0 %v1942_v19  ;;  %460 = vmatprep.mubr.f32.mxu1 %v1942_v19 }
  0xcb   :  { %1882 = vmatpush1.bf16.msra.mxu0 %v1881_v38  ;;  %1901 = vmatpush3.bf16.msra.mxu1 %v1900_v39 }
  0xcc   :  { %1884 = vmatprep.subr.bf16.mxu0 %v1883_v41  ;;  %1902 = vmatprep.subr.bf16.mxu1 %v1943_v21  ;;  %v70_v21 = vld [vmem:[%s3569_s4 + $0x38] sm:$0xff] }
  0xcd   :  { %1677 = vmatmul.mubr.msk.f32.gmra.mrb[10].mxu0 %vm44_vm0, %v2338_v45  ;;  %1690 = vmatmul.mubr.msk.f32.gmra.mrb[10].mxu1 %vm44_vm0, %v2338_v45  ;;  %v2373_v54 = vmul.f32 %v2181_v51, %v70_v21 }
  0xce   :  { %323 = vmatprep.mubr.f32.mxu0 %v1942_v19  ;;  %466 = vmatprep.mubr.f32.mxu1 %v1942_v19 }
  0xcf   :  { %1886 = vmatpush1.bf16.msra.mxu0 %v1885_v46  ;;  %1904 = vmatpush3.bf16.msra.mxu1 %v1903_v47 }
  0xd0   :  { %533 = vmatprep.subr.mxu0 %v182_v49  ;;  %1774 = vmatprep.subr.mxu1 %v1942_v19 }
  0xd1   :  { %1678 = vmatmul.mubr.msk.f32.gmra.mrb[12].mxu0 %vm44_vm0, %v2354_v50  ;;  %1691 = vmatmul.mubr.msk.f32.gmra.mrb[12].mxu1 %vm44_vm0, %v2354_v50 }
  0xd2   :  { %329 = vmatprep.mubr.f32.mxu0 %v1942_v19  ;;  %472 = vmatprep.mubr.f32.mxu1 %v1942_v19 }
  0xd3   :  { %534 = vmatpush1.msra.mxu0 %v181_v52  ;;  %1775 = vmatpush3.msra.mxu1 %v183_v53 }
  0xd5   :  { %1679 = vmatmul.mubr.msk.f32.gmra.mrb[14].mxu0 %vm44_vm0, %v2373_v54  ;;  %1692 = vmatmul.mubr.msk.f32.gmra.mrb[14].mxu1 %vm44_vm0, %v2373_v54 }
  0xd6   :  { %335 = vmatprep.mubr.f32.mxu0 %v1942_v19  ;;  %478 = vmatprep.mubr.f32.mxu1 %v1942_v19 }
  0xd9   :  { %1680 = vmatmul.mubr.msk.f32.gmra.mrb[16].mxu0 %vm44_vm0, %v2385_v57  ;;  %1693 = vmatmul.mubr.msk.f32.gmra.mrb[16].mxu1 %vm44_vm0, %v2385_v57 }
  0xda   :  { %341 = vmatprep.mubr.f32.mxu0 %v1942_v19  ;;  %484 = vmatprep.mubr.f32.mxu1 %v1942_v19 }
  0xdd   :  { %1681 = vmatmul.mubr.msk.f32.gmra.mrb[18].mxu0 %vm44_vm0, %v89_v59  ;;  %1694 = vmatmul.mubr.msk.f32.gmra.mrb[18].mxu1 %vm44_vm0, %v89_v59 }
  0xde   :  { %347 = vmatprep.mubr.f32.mxu0 %v1942_v19  ;;  %490 = vmatprep.mubr.f32.mxu1 %v1942_v19 }
  0xe1   :  { %1682 = vmatmul.mubr.msk.f32.gmra.mrb[20].mxu0 %vm44_vm0, %v90_v61  ;;  %1695 = vmatmul.mubr.msk.f32.gmra.mrb[20].mxu1 %vm44_vm0, %v90_v61 }
  0xe2   :  { %353 = vmatprep.mubr.f32.mxu0 %v1942_v19  ;;  %496 = vmatprep.mubr.f32.mxu1 %v1942_v19 }
  0xe5   :  { %1683 = vmatmul.mubr.msk.f32.gmra.mrb[22].mxu0 %vm44_vm0, %v91_v63  ;;  %1696 = vmatmul.mubr.msk.f32.gmra.mrb[22].mxu1 %vm44_vm0, %v91_v63 }
  0xe6   :  { %359 = vmatprep.mubr.f32.mxu0 %v1942_v19  ;;  %502 = vmatprep.mubr.f32.mxu1 %v1942_v19 }
  0xe9   :  { %1684 = vmatmul.mubr.msk.f32.gmra.mrb[24].mxu0 %vm44_vm0, %v92_v2  ;;  %1697 = vmatmul.mubr.msk.f32.gmra.mrb[24].mxu1 %vm44_vm0, %v92_v2 }
  0xea   :  { %573 = vmatprep.mubr.f32.mxu0 %v1942_v19  ;;  %1776 = vmatprep.mubr.msk.f32.mxu1 %vm1944_vm2, %v1942_v19 }
  0xed   :  { %1698 = vmatmul.mubr.msk.f32.vlgmr.msra.gmra.mrb[26].mxu0 %vm44_vm0, %v2190_v55  ;;  %1777 = vmatmul.mubr.msk.f32.vlgmr.msra.gmra.mrb[26].mxu1 %vm44_vm0, %v2190_v55 }
  0xee   :  { %579 = vmatprep.mubr.f32.mxu0 %v1942_v19  ;;  %1779 = vmatprep.mubr.msk.f32.mxu1 %vm1944_vm2, %v1942_v19 }
  0xf1   :  { %1699 = vmatmul.mubr.msk.f32.gmra.mrb[28].mxu0 %vm44_vm0, %v2220_v1  ;;  %1780 = vmatmul.mubr.msk.f32.gmra.mrb[28].mxu1 %vm44_vm0, %v2220_v1 }
  0xf2   :  { %585 = vmatprep.mubr.f32.mxu0 %v1942_v19  ;;  %1782 = vmatprep.mubr.msk.f32.mxu1 %vm1944_vm2, %v1942_v19 }
  0xf5   :  { %1700 = vmatmul.mubr.msk.f32.gmra.mrb[30].mxu0 %vm44_vm0, %v2251_v12  ;;  %1783 = vmatmul.mubr.msk.f32.gmra.mrb[30].mxu1 %vm44_vm0, %v2251_v12 }
  0xf6   :  { %591 = vmatprep.mubr.f32.mxu0 %v1942_v19  ;;  %1785 = vmatprep.mubr.msk.f32.mxu1 %vm1944_vm2, %v1942_v19 }
  0xf9   :  { %1701 = vmatmul.mubr.msk.f32.gmra.mrb[32].mxu0 %vm44_vm0, %v2282_v25  ;;  %1786 = vmatmul.mubr.msk.f32.gmra.mrb[32].mxu1 %vm44_vm0, %v2282_v25 }
  0xfa   :  { %597 = vmatprep.mubr.f32.mxu0 %v1942_v19  ;;  %1788 = vmatprep.mubr.msk.f32.mxu1 %vm1944_vm2, %v1942_v19 }
  0xfd   :  { %1702 = vmatmul.mubr.msk.f32.gmra.mrb[34].mxu0 %vm44_vm0, %v2313_v36  ;;  %1789 = vmatmul.mubr.msk.f32.gmra.mrb[34].mxu1 %vm44_vm0, %v2313_v36 }
  0xfe   :  { %603 = vmatprep.mubr.f32.mxu0 %v1942_v19  ;;  %1791 = vmatprep.mubr.msk.f32.mxu1 %vm1944_vm2, %v1942_v19 }
 0x101   :  { %1703 = vmatmul.mubr.msk.f32.gmra.mrb[36].mxu0 %vm44_vm0, %v2338_v45  ;;  %1792 = vmatmul.mubr.msk.f32.gmra.mrb[36].mxu1 %vm44_vm0, %v2338_v45 }
 0x102   :  { %609 = vmatprep.mubr.f32.mxu0 %v1942_v19  ;;  %1794 = vmatprep.mubr.msk.f32.mxu1 %vm1944_vm2, %v1942_v19 }
 0x105   :  { %1704 = vmatmul.mubr.msk.f32.gmra.mrb[38].mxu0 %vm44_vm0, %v2354_v50  ;;  %1795 = vmatmul.mubr.msk.f32.gmra.mrb[38].mxu1 %vm44_vm0, %v2354_v50 }
 0x106   :  { %615 = vmatprep.mubr.f32.mxu0 %v1942_v19  ;;  %1797 = vmatprep.mubr.msk.f32.mxu1 %vm1944_vm2, %v1942_v19 }
 0x109   :  { %1705 = vmatmul.mubr.msk.f32.gmra.mrb[40].mxu0 %vm44_vm0, %v2373_v54  ;;  %1798 = vmatmul.mubr.msk.f32.gmra.mrb[40].mxu1 %vm44_vm0, %v2373_v54 }
 0x10a   :  { %621 = vmatprep.mubr.f32.mxu0 %v1942_v19  ;;  %1800 = vmatprep.mubr.msk.f32.mxu1 %vm1944_vm2, %v1942_v19 }
 0x10d   :  { %1706 = vmatmul.mubr.msk.f32.gmra.mrb[42].mxu0 %vm44_vm0, %v2385_v57  ;;  %1801 = vmatmul.mubr.msk.f32.gmra.mrb[42].mxu1 %vm44_vm0, %v2385_v57 }
 0x10e   :  { %627 = vmatprep.mubr.f32.mxu0 %v1942_v19  ;;  %1803 = vmatprep.mubr.msk.f32.mxu1 %vm1944_vm2, %v1942_v19 }
 0x111   :  { %1707 = vmatmul.mubr.msk.f32.gmra.mrb[44].mxu0 %vm44_vm0, %v89_v59  ;;  %1804 = vmatmul.mubr.msk.f32.gmra.mrb[44].mxu1 %vm44_vm0, %v89_v59 }
 0x112   :  { %633 = vmatprep.mubr.f32.mxu0 %v1942_v19  ;;  %1806 = vmatprep.mubr.msk.f32.mxu1 %vm1944_vm2, %v1942_v19 }
 0x115   :  { %1708 = vmatmul.mubr.msk.f32.gmra.mrb[46].mxu0 %vm44_vm0, %v90_v61  ;;  %1807 = vmatmul.mubr.msk.f32.gmra.mrb[46].mxu1 %vm44_vm0, %v90_v61 }
 0x116   :  { %639 = vmatprep.mubr.f32.mxu0 %v1942_v19  ;;  %1809 = vmatprep.mubr.msk.f32.mxu1 %vm1944_vm2, %v1942_v19 }
 0x119   :  { %1709 = vmatmul.mubr.msk.f32.gmra.mrb[48].mxu0 %vm44_vm0, %v91_v63  ;;  %1810 = vmatmul.mubr.msk.f32.gmra.mrb[48].mxu1 %vm44_vm0, %v91_v63 }
 0x11a   :  { %645 = vmatprep.mubr.f32.mxu0 %v1942_v19  ;;  %1812 = vmatprep.mubr.msk.f32.mxu1 %vm1944_vm2, %v1942_v19 }
 0x11d   :  { %1710 = vmatmul.mubr.msk.f32.gmra.mrb[50].mxu0 %vm44_vm0, %v92_v2  ;;  %1813 = vmatmul.mubr.msk.f32.gmra.mrb[50].mxu1 %vm44_vm0, %v92_v2 }
 0x18c   :  { %v2506_v51 = vpop.f32.mrb[0].mxu0  ;;  %v2508_v55 = vpop.f32.mrb[0].mxu1 }
 0x18d   :  { %v900_v1 = vmul.f32 %v2506_v51, %v2506_v51  ;;  %v2512_v3 = vpop.f32.mrb[1].mxu0  ;;  %v2514_v4 = vpop.f32.mrb[1].mxu1  ;;  %v902_v6 = vmul.f32 %v2508_v55, %v2508_v55 }
 0x18e   :  { %v782_v5 = vadd.f32 %v2512_v3, %v2506_v51  ;;  %v901_v19 = vmul.f32 %v2512_v3, %v2512_v3  ;;  %v903_v11 = vmul.f32 %v2514_v4, %v2514_v4 }
 0x190   :  { %v991_v7 = vadd.f32 %v901_v19, %v900_v1  ;;  %v783_v8 = vadd.f32 %v782_v5, %v2508_v55  ;;  %v2523_v9 = vpop.f32.mrb[2].mxu0  ;;  %v2525_v10 = vpop.f32.mrb[2].mxu1 }
 0x191   :  { %v907_v12 = vmul.f32 %v2523_v9, %v2523_v9  ;;  %v2531_v13 = vpop.f32.mrb[3].mxu0  ;;  %v2533_v14 = vpop.f32.mrb[3].mxu1  ;;  %v909_v22 = vmul.f32 %v2525_v10, %v2525_v10 }
 0x192   :  { %v2536_v15 = vadd.f32 %v783_v8, %v2514_v4  ;;  %v992_v16 = vadd.f32 %v991_v7, %v902_v6  ;;  %v792_v17 = vadd.f32 %v2531_v13, %v2523_v9  ;;  %v908_v18 = vmul.f32 %v2531_v13, %v2531_v13 }
 0x193   :  { %v910_v27 = vmul.f32 %v2533_v14, %v2533_v14 }
 0x194   :  { %v2542_v20 = vadd.f32 %v992_v16, %v903_v11  ;;  %v1000_v23 = vadd.f32 %v908_v18, %v907_v12  ;;  %v793_v24 = vadd.f32 %v792_v17, %v2525_v10  ;;  %v2547_v25 = vpop.f32.mrb[4].mxu0  ;;  %v2549_v26 = vpop.f32.mrb[4].mxu1 }
 0x195   :  { %v914_v28 = vmul.f32 %v2547_v25, %v2547_v25  ;;  %v2555_v29 = vpop.f32.mrb[5].mxu0  ;;  %v2557_v30 = vpop.f32.mrb[5].mxu1  ;;  %v916_v36 = vmul.f32 %v2549_v26, %v2549_v26 }
 0x196   :  { %v2560_v31 = vadd.f32 %v793_v24, %v2533_v14  ;;  %v1001_v32 = vadd.f32 %v1000_v23, %v909_v22  ;;  %v801_v33 = vadd.f32 %v2555_v29, %v2547_v25  ;;  %v915_v34 = vmul.f32 %v2555_v29, %v2555_v29 }
 0x197   :  { %v917_v41 = vmul.f32 %v2557_v30, %v2557_v30 }
 0x198   :  { %v2566_v35 = vadd.f32 %v1001_v32, %v910_v27  ;;  %v1009_v37 = vadd.f32 %v915_v34, %v914_v28  ;;  %v802_v38 = vadd.f32 %v801_v33, %v2549_v26  ;;  %v2571_v39 = vpop.f32.mrb[6].mxu0  ;;  %v2573_v40 = vpop.f32.mrb[6].mxu1 }
 0x199   :  { %v921_v42 = vmul.f32 %v2571_v39, %v2571_v39  ;;  %v2579_v43 = vpop.f32.mrb[7].mxu0  ;;  %v2581_v44 = vpop.f32.mrb[7].mxu1  ;;  %v923_v50 = vmul.f32 %v2573_v40, %v2573_v40 }
 0x19a   :  { %v2584_v45 = vadd.f32 %v802_v38, %v2557_v30  ;;  %v1010_v46 = vadd.f32 %v1009_v37, %v916_v36  ;;  %v810_v47 = vadd.f32 %v2579_v43, %v2571_v39  ;;  %v922_v48 = vmul.f32 %v2579_v43, %v2579_v43 }
 0x19b   :  { %v924_v56 = vmul.f32 %v2581_v44, %v2581_v44 }
 0x19c   :  { %v2590_v49 = vadd.f32 %v1010_v46, %v917_v41  ;;  %v1018_v21 = vadd.f32 %v922_v48, %v921_v42  ;;  %v811_v52 = vadd.f32 %v810_v47, %v2573_v40  ;;  %v2595_v53 = vpop.f32.mrb[8].mxu0  ;;  %v2597_v54 = vpop.f32.mrb[8].mxu1 }
 0x19d   :  { %3627 = vst [vmem:[#allocation2_spill] sm:$0xff] %v2595_v53  ;;  %3628 = vst [vmem:[#allocation3_spill] sm:$0xff] %v2597_v54  ;;  %v928_v57 = vmul.f32 %v2595_v53, %v2595_v53  ;;  %v2603_v58 = vpop.f32.mrb[9].mxu0  ;;  %v2605_v59 = vpop.f32.mrb[9].mxu1  ;;  %v930_v2 = vmul.f32 %v2597_v54, %v2597_v54 }
 0x19e   :  { %3629 = vst [vmem:[#allocation4_spill] sm:$0xff] %v2603_v58  ;;  %3630 = vst [vmem:[#allocation5_spill] sm:$0xff] %v2605_v59  ;;  %v2608_v60 = vadd.f32 %v811_v52, %v2581_v44  ;;  %v1019_v61 = vadd.f32 %v1018_v21, %v923_v50  ;;  %v819_v62 = vadd.f32 %v2603_v58, %v2595_v53 }
 0x19f   :  { %v929_v63 = vmul.f32 %v2603_v58, %v2603_v58  ;;  %v931_v7 = vmul.f32 %v2605_v59, %v2605_v59 }
 0x1a0   :  { %v2614_v0 = vadd.f32 %v1019_v61, %v924_v56  ;;  %v820_v5 = vadd.f32 %v819_v62, %v2597_v54  ;;  %v2619_v19 = vpop.f32.mrb[10].mxu0  ;;  %v2621_v6 = vpop.f32.mrb[10].mxu1 }
 0x1a1   :  { %v1027_v1 = vadd.f32 %v929_v63, %v928_v57  ;;  %3631 = vst [vmem:[#allocation6_spill] sm:$0xff] %v2619_v19  ;;  %3632 = vst [vmem:[#allocation7_spill] sm:$0xff] %v2621_v6  ;;  %v935_v8 = vmul.f32 %v2619_v19, %v2619_v19  ;;  %v2627_v11 = vpop.f32.mrb[11].mxu0  ;;  %v2629_v12 = vpop.f32.mrb[11].mxu1  ;;  %v937_v24 = vmul.f32 %v2621_v6, %v2621_v6 }
 0x1a2   :  { %3633 = vst [vmem:[#allocation8_spill] sm:$0xff] %v2627_v11  ;;  %3634 = vst [vmem:[#allocation9_spill] sm:$0xff] %v2629_v12  ;;  %v2632_v16 = vadd.f32 %v820_v5, %v2605_v59  ;;  %v828_v18 = vadd.f32 %v2627_v11, %v2619_v19  ;;  %v936_v22 = vmul.f32 %v2627_v11, %v2627_v11 }
 0x1a3   :  { %v1028_v17 = vadd.f32 %v1027_v1, %v930_v2  ;;  %v938_v34 = vmul.f32 %v2629_v12, %v2629_v12 }
 0x1a4   :  { %v1036_v27 = vadd.f32 %v936_v22, %v935_v8  ;;  %v829_v28 = vadd.f32 %v828_v18, %v2621_v6  ;;  %v2643_v32 = vpop.f32.mrb[12].mxu0  ;;  %v2645_v33 = vpop.f32.mrb[12].mxu1 }
 0x1a5   :  { %v2638_v23 = vadd.f32 %v1028_v17, %v931_v7  ;;  %3635 = vst [vmem:[#allocation10_spill] sm:$0xff] %v2643_v32  ;;  %3636 = vst [vmem:[#allocation11_spill] sm:$0xff] %v2645_v33  ;;  %v942_v36 = vmul.f32 %v2643_v32, %v2643_v32  ;;  %v2651_v37 = vpop.f32.mrb[13].mxu0  ;;  %v2653_v38 = vpop.f32.mrb[13].mxu1  ;;  %v944_v50 = vmul.f32 %v2645_v33, %v2645_v33 }
 0x1a6   :  { %3637 = vst [vmem:[#allocation12_spill] sm:$0xff] %v2651_v37  ;;  %3638 = vst [vmem:[#allocation13_spill] sm:$0xff] %v2653_v38  ;;  %v2656_v41 = vadd.f32 %v829_v28, %v2629_v12  ;;  %v1037_v42 = vadd.f32 %v1036_v27, %v937_v24  ;;  %v837_v46 = vadd.f32 %v2651_v37, %v2643_v32 }
 0x1a7   :  { %v943_v47 = vmul.f32 %v2651_v37, %v2651_v37  ;;  %v945_v61 = vmul.f32 %v2653_v38, %v2653_v38 }
 0x1a8   :  { %v2662_v48 = vadd.f32 %v1037_v42, %v938_v34  ;;  %v838_v52 = vadd.f32 %v837_v46, %v2645_v33  ;;  %v2667_v56 = vpop.f32.mrb[14].mxu0  ;;  %v2669_v57 = vpop.f32.mrb[14].mxu1 }
 0x1a9   :  { %v1045_v21 = vadd.f32 %v943_v47, %v942_v36  ;;  %3639 = vst [vmem:[#allocation14_spill] sm:$0xff] %v2667_v56  ;;  %3640 = vst [vmem:[#allocation15_spill] sm:$0xff] %v2669_v57  ;;  %v949_v62 = vmul.f32 %v2667_v56, %v2667_v56  ;;  %v2675_v63 = vpop.f32.mrb[15].mxu0  ;;  %v2677_v2 = vpop.f32.mrb[15].mxu1  ;;  %v951_v18 = vmul.f32 %v2669_v57, %v2669_v57 }
 0x1aa   :  { %3641 = vst [vmem:[#allocation16_spill] sm:$0xff] %v2675_v63  ;;  %3642 = vst [vmem:[#allocation17_spill] sm:$0xff] %v2677_v2  ;;  %v2680_v1 = vadd.f32 %v838_v52, %v2653_v38  ;;  %v846_v7 = vadd.f32 %v2675_v63, %v2667_v56  ;;  %v950_v8 = vmul.f32 %v2675_v63, %v2675_v63 }
 0x1ab   :  { %v1046_v5 = vadd.f32 %v1045_v21, %v944_v50  ;;  %v952_v34 = vmul.f32 %v2677_v2, %v2677_v2 }
 0x1ac   :  { %v1054_v22 = vadd.f32 %v950_v8, %v949_v62  ;;  %v847_v24 = vadd.f32 %v846_v7, %v2669_v57  ;;  %v2691_v27 = vpop.f32.mrb[16].mxu0  ;;  %v2693_v28 = vpop.f32.mrb[16].mxu1 }
 0x1ad   :  { %v2686_v17 = vadd.f32 %v1046_v5, %v945_v61  ;;  %3643 = vst [vmem:[#allocation18_spill] sm:$0xff] %v2691_v27  ;;  %3644 = vst [vmem:[#allocation19_spill] sm:$0xff] %v2693_v28  ;;  %v956_v36 = vmul.f32 %v2691_v27, %v2691_v27  ;;  %v2699_v42 = vpop.f32.mrb[17].mxu0  ;;  %v2701_v46 = vpop.f32.mrb[17].mxu1  ;;  %v958_v62 = vmul.f32 %v2693_v28, %v2693_v28 }
 0x1ae   :  { %3645 = vst [vmem:[#allocation20_spill] sm:$0xff] %v2699_v42  ;;  %3646 = vst [vmem:[#allocation21_spill] sm:$0xff] %v2701_v46  ;;  %v2704_v47 = vadd.f32 %v847_v24, %v2677_v2  ;;  %v1055_v50 = vadd.f32 %v1054_v22, %v951_v18  ;;  %v855_v21 = vadd.f32 %v2699_v42, %v2691_v27 }
 0x1af   :  { %v957_v52 = vmul.f32 %v2699_v42, %v2699_v42  ;;  %v959_v18 = vmul.f32 %v2701_v46, %v2701_v46 }
 0x1b0   :  { %v2710_v61 = vadd.f32 %v1055_v50, %v952_v34  ;;  %v856_v7 = vadd.f32 %v855_v21, %v2693_v28  ;;  %v2715_v8 = vpop.f32.mrb[18].mxu0  ;;  %v2717_v57 = vpop.f32.mrb[18].mxu1 }
 0x1b1   :  { %v1063_v5 = vadd.f32 %v957_v52, %v956_v36  ;;  %3647 = vst [vmem:[#allocation22_spill] sm:$0xff] %v2715_v8  ;;  %3648 = vst [vmem:[#allocation23_spill] sm:$0xff] %v2717_v57  ;;  %v963_v22 = vmul.f32 %v2715_v8, %v2715_v8  ;;  %v2723_v24 = vpop.f32.mrb[19].mxu0  ;;  %v2725_v34 = vpop.f32.mrb[19].mxu1  ;;  %v965_v42 = vmul.f32 %v2717_v57, %v2717_v57 }
 0x1b2   :  { %3649 = vst [vmem:[#allocation24_spill] sm:$0xff] %v2723_v24  ;;  %3650 = vst [vmem:[#allocation25_spill] sm:$0xff] %v2725_v34  ;;  %v2728_v50 = vadd.f32 %v856_v7, %v2701_v46  ;;  %v864_v21 = vadd.f32 %v2723_v24, %v2715_v8  ;;  %v964_v52 = vmul.f32 %v2723_v24, %v2723_v24 }
 0x1b3   :  { %v1064_v36 = vadd.f32 %v1063_v5, %v958_v62  ;;  %v966_v62 = vmul.f32 %v2725_v34, %v2725_v34 }
 0x1b4   :  { %v1072_v27 = vadd.f32 %v964_v52, %v963_v22  ;;  %v865_v2 = vadd.f32 %v864_v21, %v2717_v57  ;;  %v2739_v63 = vpop.f32.mrb[20].mxu0  ;;  %v2741_v56 = vpop.f32.mrb[20].mxu1 }
 0x1b5   :  { %v2734_v28 = vadd.f32 %v1064_v36, %v959_v18  ;;  %3651 = vst [vmem:[#allocation26_spill] sm:$0xff] %v2739_v63  ;;  %3652 = vst [vmem:[#allocation27_spill] sm:$0xff] %v2741_v56  ;;  %v970_v5 = vmul.f32 %v2739_v63, %v2739_v63  ;;  %v2747_v7 = vpop.f32.mrb[21].mxu0  ;;  %v2749_v18 = vpop.f32.mrb[21].mxu1  ;;  %v972_v24 = vmul.f32 %v2741_v56, %v2741_v56 }
 0x1b6   :  { %3653 = vst [vmem:[#allocation28_spill] sm:$0xff] %v2747_v7  ;;  %3654 = vst [vmem:[#allocation29_spill] sm:$0xff] %v2749_v18  ;;  %v2752_v36 = vadd.f32 %v865_v2, %v2725_v34  ;;  %v1073_v22 = vadd.f32 %v1072_v27, %v965_v42  ;;  %v873_v21 = vadd.f32 %v2747_v7, %v2739_v63 }
 0x1b7   :  { %v971_v52 = vmul.f32 %v2747_v7, %v2747_v7  ;;  %v973_v2 = vmul.f32 %v2749_v18, %v2749_v18 }
 0x1b8   :  { %v2758_v57 = vadd.f32 %v1073_v22, %v966_v62  ;;  %v874_v46 = vadd.f32 %v873_v21, %v2741_v56  ;;  %v2763_v38 = vpop.f32.mrb[22].mxu0  ;;  %v2765_v33 = vpop.f32.mrb[22].mxu1 }
 0x1b9   :  { %v1081_v8 = vadd.f32 %v971_v52, %v970_v5  ;;  %3655 = vst [vmem:[#allocation30_spill] sm:$0xff] %v2763_v38  ;;  %3656 = vst [vmem:[#allocation31_spill] sm:$0xff] %v2765_v33  ;;  %v977_v27 = vmul.f32 %v2763_v38, %v2763_v38  ;;  %v2771_v42 = vpop.f32.mrb[23].mxu0  ;;  %v2773_v62 = vpop.f32.mrb[23].mxu1  ;;  %v979_v7 = vmul.f32 %v2765_v33, %v2765_v33 }
 0x1ba   :  { %3657 = vst [vmem:[#allocation32_spill] sm:$0xff] %v2771_v42  ;;  %3658 = vst [vmem:[#allocation33_spill] sm:$0xff] %v2773_v62  ;;  %v2776_v22 = vadd.f32 %v874_v46, %v2749_v18  ;;  %v882_v21 = vadd.f32 %v2771_v42, %v2763_v38  ;;  %v978_v52 = vmul.f32 %v2771_v42, %v2771_v42 }
 0x1bb   :  { %v1082_v5 = vadd.f32 %v1081_v8, %v972_v24  ;;  %v980_v46 = vmul.f32 %v2773_v62, %v2773_v62 }
 0x1bc   :  { %v1090_v63 = vadd.f32 %v978_v52, %v977_v27  ;;  %v883_v34 = vadd.f32 %v882_v21, %v2765_v33  ;;  %v2787_v37 = vpop.f32.mrb[24].mxu0  ;;  %v2789_v32 = vpop.f32.mrb[24].mxu1 }
 0x1bd   :  { %v2782_v56 = vadd.f32 %v1082_v5, %v973_v2  ;;  %3659 = vst [vmem:[#allocation34_spill] sm:$0xff] %v2787_v37  ;;  %3660 = vst [vmem:[#allocation35_spill] sm:$0xff] %v2789_v32  ;;  %v984_v8 = vmul.f32 %v2787_v37, %v2787_v37  ;;  %v2795_v24 = vpop.f32.mrb[25].mxu0  ;;  %v2797_v2 = vpop.f32.mrb[25].mxu1  ;;  %v986_v42 = vmul.f32 %v2789_v32, %v2789_v32 }
 0x1be   :  { %3661 = vst [vmem:[#allocation36_spill] sm:$0xff] %v2795_v24  ;;  %3662 = vst [vmem:[#allocation37_spill] sm:$0xff] %v2797_v2  ;;  %v2800_v5 = vadd.f32 %v883_v34, %v2773_v62  ;;  %v1091_v27 = vadd.f32 %v1090_v63, %v979_v7  ;;  %v891_v21 = vadd.f32 %v2795_v24, %v2787_v37 }
 0x1bf   :  { %v985_v52 = vmul.f32 %v2795_v24, %v2795_v24 }
 0x1c0   :  { %v2806_v33 = vadd.f32 %v1091_v27, %v980_v46  ;;  %v892_v18 = vadd.f32 %v891_v21, %v2789_v32  ;;  %v2811_v12 = vpop.f32.mrb[26].mxu0  ;;  %v2813_v6 = vpop.f32.mrb[26].mxu1 }
 0x1c1   :  { %v1099_v38 = vadd.f32 %v985_v52, %v984_v8  ;;  %v785_v63 = vadd.f32 %v2536_v15, %v2811_v12  ;;  %v904_v34 = vmul.f32 %v2811_v12, %v2811_v12  ;;  %v2819_v7 = vpop.f32.mrb[27].mxu0  ;;  %v1778_v46 = vpop.f32.mrb[27].mxu1  ;;  %v987_v8 = vmul.f32 %v2797_v2, %v2797_v2 }
 0x1c2   :  { %v2822_v27 = vadd.f32 %v892_v18, %v2797_v2  ;;  %v905_v52 = vmul.f32 %v2819_v7, %v2819_v7  ;;  %v906_v15 = vmul.f32 %v2813_v6, %v2813_v6  ;;  %v788_v2 = vsel %vm787_vm3, %v2813_v6, 0.0 }
 0x1c3   :  { %v1100_v21 = vadd.f32 %v1099_v38, %v986_v42  ;;  %v786_v32 = vadd.f32 %v785_v63, %v2819_v7  ;;  %v994_v24 = vadd.f32 %v2542_v20, %v904_v34 }
 0x1c4   :  { %v2834_v46 = vpop.f32.mrb[28].mxu0  ;;  %v2836_v18 = vpop.f32.mrb[28].mxu1 }
 0x1c5   :  { %v2832_v37 = vadd.f32 %v1100_v21, %v987_v8  ;;  %v795_v38 = vadd.f32 %v2560_v31, %v2834_v46  ;;  %v911_v42 = vmul.f32 %v2834_v46, %v2834_v46  ;;  %v2844_v62 = vpop.f32.mrb[29].mxu0  ;;  %v1781_v63 = vpop.f32.mrb[29].mxu1  ;;  %v789_v11 = vadd.f32 %v788_v2, %v786_v32 }
 0x1c6   :  { %v912_v20 = vmul.f32 %v2844_v62, %v2844_v62  ;;  %v995_v34 = vadd.f32 %v994_v24, %v905_v52  ;;  %v913_v8 = vmul.f32 %v2836_v18, %v2836_v18  ;;  %v996_v21 = vsel %vm787_vm3, %v906_v15, 0.0 }
 0x1c7   :  { %790 = vadd.xlane.f32.xlu1 %v789_v11  ;;  %v796_v19 = vadd.f32 %v795_v38, %v2844_v62  ;;  %v1003_v31 = vadd.f32 %v2566_v35, %v911_v42  ;;  %v797_v32 = vsel %vm787_vm3, %v2836_v18, 0.0 }
 0x1c8   :  { %v2853_v59 = vpop.f32.mrb[30].mxu0  ;;  %v2855_v54 = vpop.f32.mrb[30].mxu1  ;;  %v997_v63 = vadd.f32 %v996_v21, %v995_v34  ;;  %v1005_v34 = vsel %vm787_vm3, %v913_v8, 0.0 }
 0x1c9   :  { %v804_v24 = vadd.f32 %v2584_v45, %v2853_v59  ;;  %v918_v11 = vmul.f32 %v2853_v59, %v2853_v59  ;;  %v1784_v2 = vpop.f32.mrb[31].mxu1  ;;  %v2863_v52 = vpop.f32.mrb[31].mxu0  ;;  %v798_v15 = vadd.f32 %v797_v32, %v796_v19  ;;  %v1004_v38 = vadd.f32 %v1003_v31, %v912_v20 }
 0x1ca   :  { %998 = vadd.xlane.f32.xlu0 %v997_v63  ;;  %v919_v35 = vmul.f32 %v2863_v52, %v2863_v52  ;;  %v920_v42 = vmul.f32 %v2855_v54, %v2855_v54  ;;  %v806_v63 = vsel %vm787_vm3, %v2855_v54, 0.0 }
 0x1cb   :  { %799 = vadd.xlane.f32.xlu1 %v798_v15  ;;  %v805_v45 = vadd.f32 %v804_v24, %v2863_v52  ;;  %v1012_v21 = vadd.f32 %v2590_v49, %v918_v11  ;;  %v1006_v19 = vadd.f32 %v1005_v34, %v1004_v38 }
 0x1cc   :  { %v2872_v58 = vpop.f32.mrb[32].mxu0  ;;  %v2874_v2 = vpop.f32.mrb[32].mxu1  ;;  %v1014_v38 = vsel %vm787_vm3, %v920_v42, 0.0 }
 0x1cd   :  { %3663 = vst [vmem:[#allocation38_spill] sm:$0xff] %v2872_v58  ;;  %v813_v20 = vadd.f32 %v2608_v60, %v2872_v58  ;;  %v925_v31 = vmul.f32 %v2872_v58, %v2872_v58  ;;  %v2882_v32 = vpop.f32.mrb[33].mxu0  ;;  %v1787_v8 = vpop.f32.mrb[33].mxu1  ;;  %v807_v24 = vadd.f32 %v806_v63, %v805_v45  ;;  %v1013_v11 = vadd.f32 %v1012_v21, %v919_v35 }
 0x1ce   :  { %v926_v49 = vmul.f32 %v2882_v32, %v2882_v32  ;;  %v927_v15 = vmul.f32 %v2874_v2, %v2874_v2  ;;  %v815_v63 = vsel %vm787_vm3, %v2874_v2, 0.0 }
 0x1cf   :  { %1007 = vadd.xlane.f32.xlu1 %v1006_v19  ;;  %808 = vadd.xlane.f32.xlu0 %v807_v24  ;;  %v814_v60 = vadd.f32 %v813_v20, %v2882_v32  ;;  %v1021_v34 = vadd.f32 %v2614_v0, %v925_v31  ;;  %v1015_v45 = vadd.f32 %v1014_v38, %v1013_v11 }
 0x1d0   :  { %v2891_v53 = vpop.f32.mrb[34].mxu0  ;;  %v2893_v58 = vpop.f32.mrb[34].mxu1  ;;  %v1023_v24 = vsel %vm787_vm3, %v927_v15, 0.0 }
 0x1d1   :  { %3664 = vst [vmem:[#allocation39_spill] sm:$0xff] %v2891_v53  ;;  %v822_v35 = vadd.f32 %v2632_v16, %v2891_v53  ;;  %v932_v21 = vmul.f32 %v2891_v53, %v2891_v53  ;;  %v2901_v19 = vpop.f32.mrb[35].mxu0  ;;  %v1790_v42 = vpop.f32.mrb[35].mxu1  ;;  %v816_v20 = vadd.f32 %v815_v63, %v814_v60  ;;  %v934_v0 = vmul.f32 %v2893_v58, %v2893_v58 }
 0x1d2   :  { %v933_v31 = vmul.f32 %v2901_v19, %v2901_v19  ;;  %v1022_v8 = vadd.f32 %v1021_v34, %v926_v49 }
 0x1d3   :  { %1016 = vadd.xlane.f32.xlu0 %v1015_v45  ;;  %817 = vadd.xlane.f32.xlu1 %v816_v20  ;;  %v1030_v16 = vadd.f32 %v2638_v23, %v932_v21  ;;  %v823_v11 = vadd.f32 %v822_v35, %v2901_v19  ;;  %v824_v23 = vsel %vm787_vm3, %v2893_v58, 0.0  ;;  %v1032_v35 = vsel %vm787_vm3, %v934_v0, 0.0 }
 0x1d4   :  { %v2910_v38 = vpop.f32.mrb[36].mxu0  ;;  %v2912_v53 = vpop.f32.mrb[36].mxu1  ;;  %v1024_v60 = vadd.f32 %v1023_v24, %v1022_v8 }
 0x1d5   :  { %3665 = vst [vmem:[#allocation40_spill] sm:$0xff] %v2912_v53  ;;  %v831_v63 = vadd.f32 %v2656_v41, %v2910_v38  ;;  %v939_v42 = vmul.f32 %v2910_v38, %v2910_v38  ;;  %v2918_v49 = vpop.f32.mrb[37].mxu0  ;;  %v1793_v34 = vpop.f32.mrb[37].mxu1  ;;  %v1031_v45 = vadd.f32 %v1030_v16, %v933_v31  ;;  %v825_v21 = vadd.f32 %v824_v23, %v823_v11 }
 0x1d6   :  { %3666 = vst [vmem:[#allocation41_spill] sm:$0xff] %v2918_v49  ;;  %v940_v15 = vmul.f32 %v2918_v49, %v2918_v49  ;;  %v941_v20 = vmul.f32 %v2912_v53, %v2912_v53  ;;  %v833_v16 = vsel %vm787_vm3, %v2912_v53, 0.0 }
 0x1d7   :  { %1025 = vadd.xlane.f32.xlu1 %v1024_v60  ;;  %v1033_v41 = vadd.f32 %v1032_v35, %v1031_v45  ;;  %v832_v8 = vadd.f32 %v831_v63, %v2918_v49  ;;  %v1039_v24 = vadd.f32 %v2662_v48, %v939_v42 }
 0x1d8   :  { %v2929_v34 = vpop.f32.mrb[38].mxu0  ;;  %v2931_v31 = vpop.f32.mrb[38].mxu1 }
 0x1d9   :  { %3667 = vst [vmem:[#allocation42_spill] sm:$0xff] %v2929_v34  ;;  %v840_v0 = vadd.f32 %v2680_v1, %v2929_v34  ;;  %v946_v11 = vmul.f32 %v2929_v34, %v2929_v34  ;;  %v1796_v23 = vpop.f32.mrb[39].mxu1  ;;  %1034 = vadd.xlane.f32.xlu0 %v1033_v41  ;;  %v2939_v60 = vpop.f32.mrb[39].mxu0  ;;  %v834_v63 = vadd.f32 %v833_v16, %v832_v8  ;;  %v1041_v1 = vsel %vm787_vm3, %v941_v20, 0.0 }
 0x1da   :  { %v948_v48 = vmul.f32 %v2931_v31, %v2931_v31  ;;  %v947_v42 = vmul.f32 %v2939_v60, %v2939_v60  ;;  %v1040_v45 = vadd.f32 %v1039_v24, %v940_v15 }
 0x1db   :  { %826 = vadd.xlane.f32.xlu1 %v825_v21  ;;  %v1048_v35 = vadd.f32 %v2686_v17, %v946_v11  ;;  %v841_v53 = vadd.f32 %v840_v0, %v2939_v60  ;;  %v842_v17 = vsel %vm787_vm3, %v2931_v31, 0.0 }
 0x1dc   :  { %v2948_v34 = vpop.f32.mrb[40].mxu0  ;;  %v2950_v41 = vpop.f32.mrb[40].mxu1  ;;  %v1042_v23 = vadd.f32 %v1041_v1, %v1040_v45  ;;  %v1050_v24 = vsel %vm787_vm3, %v948_v48, 0.0 }
 0x1dd   :  { %3668 = vst [vmem:[#allocation43_spill] sm:$0xff] %v2950_v41  ;;  %v849_v8 = vadd.f32 %v2704_v47, %v2948_v34  ;;  %v953_v16 = vmul.f32 %v2948_v34, %v2948_v34  ;;  %v2956_v49 = vpop.f32.mrb[41].mxu0  ;;  %v1799_v15 = vpop.f32.mrb[41].mxu1  ;;  %v1049_v21 = vadd.f32 %v1048_v35, %v947_v42  ;;  %v843_v0 = vadd.f32 %v842_v17, %v841_v53 }
 0x1de   :  { %3669 = vst [vmem:[#allocation44_spill] sm:$0xff] %v2956_v49  ;;  %v954_v20 = vmul.f32 %v2956_v49, %v2956_v49  ;;  %v955_v11 = vmul.f32 %v2950_v41, %v2950_v41  ;;  %v851_v35 = vsel %vm787_vm3, %v2950_v41, 0.0 }
 0x1df   :  { %835 = vadd.xlane.f32.xlu1 %v834_v63  ;;  %v1051_v47 = vadd.f32 %v1050_v24, %v1049_v21  ;;  %v850_v45 = vadd.f32 %v849_v8, %v2956_v49  ;;  %v1057_v1 = vadd.f32 %v2710_v61, %v953_v16 }
 0x1e0   :  { %v2967_v15 = vpop.f32.mrb[42].mxu0  ;;  %v2969_v42 = vpop.f32.mrb[42].mxu1 }
 0x1e1   :  { %3670 = vst [vmem:[#allocation45_spill] sm:$0xff] %v2967_v15  ;;  %v858_v48 = vadd.f32 %v2728_v50, %v2967_v15  ;;  %v960_v53 = vmul.f32 %v2967_v15, %v2967_v15  ;;  %v1802_v17 = vpop.f32.mrb[43].mxu1  ;;  %1052 = vadd.xlane.f32.xlu0 %v1051_v47  ;;  %v2977_v63 = vpop.f32.mrb[43].mxu0  ;;  %v852_v8 = vadd.f32 %v851_v35, %v850_v45  ;;  %v1059_v50 = vsel %vm787_vm3, %v955_v11, 0.0 }
 0x1e2   :  { %v962_v61 = vmul.f32 %v2969_v42, %v2969_v42  ;;  %v961_v16 = vmul.f32 %v2977_v63, %v2977_v63  ;;  %v1058_v21 = vadd.f32 %v1057_v1, %v954_v20 }
 0x1e3   :  { %1043 = vadd.xlane.f32.xlu1 %v1042_v23  ;;  %v1066_v24 = vadd.f32 %v2734_v28, %v960_v53  ;;  %v859_v41 = vadd.f32 %v858_v48, %v2977_v63  ;;  %v860_v28 = vsel %vm787_vm3, %v2969_v42, 0.0 }
 0x1e4   :  { %v2986_v15 = vpop.f32.mrb[44].mxu0  ;;  %v2988_v47 = vpop.f32.mrb[44].mxu1  ;;  %v1060_v17 = vadd.f32 %v1059_v50, %v1058_v21  ;;  %v1068_v1 = vsel %vm787_vm3, %v962_v61, 0.0 }
 0x1e5   :  { %3671 = vst [vmem:[#allocation46_spill] sm:$0xff] %v2988_v47  ;;  %v867_v45 = vadd.f32 %v2752_v36, %v2986_v15  ;;  %v967_v35 = vmul.f32 %v2986_v15, %v2986_v15  ;;  %v2994_v49 = vpop.f32.mrb[45].mxu0  ;;  %v1805_v23 = vpop.f32.mrb[45].mxu1  ;;  %v1067_v20 = vadd.f32 %v1066_v24, %v961_v16  ;;  %v861_v48 = vadd.f32 %v860_v28, %v859_v41 }
 0x1e6   :  { %3672 = vst [vmem:[#allocation47_spill] sm:$0xff] %v2994_v49  ;;  %v968_v11 = vmul.f32 %v2994_v49, %v2994_v49  ;;  %v969_v53 = vmul.f32 %v2988_v47, %v2988_v47  ;;  %v869_v24 = vsel %vm787_vm3, %v2988_v47, 0.0 }
 0x1e7   :  { %844 = vadd.xlane.f32.xlu1 %v843_v0  ;;  %v1069_v36 = vadd.f32 %v1068_v1, %v1067_v20  ;;  %v868_v21 = vadd.f32 %v867_v45, %v2994_v49  ;;  %v1075_v50 = vadd.f32 %v2758_v57, %v967_v35 }
 0x1e8   :  { %v3005_v23 = vpop.f32.mrb[46].mxu0  ;;  %v3007_v16 = vpop.f32.mrb[46].mxu1 }
 0x1e9   :  { %3673 = vst [vmem:[#allocation48_spill] sm:$0xff] %v3005_v23  ;;  %3674 = vst [vmem:[#allocation49_spill] sm:$0xff] %v3007_v16  ;;  %v876_v61 = vadd.f32 %v2776_v22, %v3005_v23  ;;  %v974_v41 = vmul.f32 %v3005_v23, %v3005_v23  ;;  %v1808_v28 = vpop.f32.mrb[47].mxu1  ;;  %1070 = vadd.xlane.f32.xlu0 %v1069_v36  ;;  %v3015_v0 = vpop.f32.mrb[47].mxu0  ;;  %v870_v45 = vadd.f32 %v869_v24, %v868_v21 }
 0x1ea   :  { %v976_v57 = vmul.f32 %v3007_v16, %v3007_v16  ;;  %v975_v35 = vmul.f32 %v3015_v0, %v3015_v0  ;;  %v1076_v20 = vadd.f32 %v1075_v50, %v968_v11  ;;  %v1077_v22 = vsel %vm787_vm3, %v969_v53, 0.0 }
 0x1eb   :  { %853 = vadd.xlane.f32.xlu1 %v852_v8  ;;  %v1084_v1 = vadd.f32 %v2782_v56, %v974_v41  ;;  %v877_v47 = vadd.f32 %v876_v61, %v3015_v0  ;;  %v878_v56 = vsel %vm787_vm3, %v3007_v16, 0.0 }
 0x1ec   :  { %v3024_v23 = vpop.f32.mrb[48].mxu0  ;;  %v3026_v36 = vpop.f32.mrb[48].mxu1  ;;  %v1078_v28 = vadd.f32 %v1077_v22, %v1076_v20  ;;  %v1086_v50 = vsel %vm787_vm3, %v976_v57, 0.0 }
 0x1ed   :  { %3675 = vst [vmem:[#allocation50_spill] sm:$0xff] %v3024_v23  ;;  %3676 = vst [vmem:[#allocation51_spill] sm:$0xff] %v3026_v36  ;;  %v885_v21 = vadd.f32 %v2800_v5, %v3024_v23  ;;  %v981_v24 = vmul.f32 %v3024_v23, %v3024_v23  ;;  %v3032_v49 = vpop.f32.mrb[49].mxu0  ;;  %v1811_v8 = vpop.f32.mrb[49].mxu1  ;;  %v1085_v11 = vadd.f32 %v1084_v1, %v975_v35  ;;  %v887_v1 = vsel %vm787_vm3, %v3026_v36, 0.0 }
 0x1ee   :  { %3677 = vst [vmem:[#allocation52_spill] sm:$0xff] %v3032_v49  ;;  %v982_v53 = vmul.f32 %v3032_v49, %v3032_v49  ;;  %v879_v61 = vadd.f32 %v878_v56, %v877_v47  ;;  %v983_v41 = vmul.f32 %v3026_v36, %v3026_v36 }
 0x1ef   :  { %1061 = vadd.xlane.f32.xlu1 %v1060_v17  ;;  %v1087_v5 = vadd.f32 %v1086_v50, %v1085_v11  ;;  %v886_v20 = vadd.f32 %v885_v21, %v3032_v49  ;;  %v1093_v22 = vadd.f32 %v2806_v33, %v981_v24 }
 0x1f0   :  { %v3043_v8 = vpop.f32.mrb[50].mxu0  ;;  %v3045_v35 = vpop.f32.mrb[50].mxu1  ;;  %v1095_v36 = vsel %vm787_vm3, %v983_v41, 0.0 }
 0x1f1   :  { %3678 = vst [vmem:[#allocation53_spill] sm:$0xff] %v3043_v8  ;;  %3679 = vst [vmem:[#allocation54_spill] sm:$0xff] %v3045_v35  ;;  %v894_v57 = vadd.f32 %v2822_v27, %v3043_v8  ;;  %v988_v47 = vmul.f32 %v3043_v8, %v3043_v8  ;;  %v1814_v56 = vpop.f32.mrb[51].mxu1  ;;  %1088 = vadd.xlane.f32.xlu0 %v1087_v5  ;;  %v3053_v17 = vpop.f32.mrb[51].mxu0  ;;  %v888_v21 = vadd.f32 %v887_v1, %v886_v20 }
 0x1f2   :  { %3680 = vst [vmem:[#allocation55_spill] sm:$0xff] %v3053_v17  ;;  %v990_v33 = vmul.f32 %v3045_v35, %v3045_v35  ;;  %v989_v24 = vmul.f32 %v3053_v17, %v3053_v17  ;;  %v1094_v11 = vadd.f32 %v1093_v22, %v982_v53  ;;  %v896_v5 = vsel %vm787_vm3, %v3045_v35, 0.0 }
 0x1f3   :  { %v895_v50 = vadd.f32 %v894_v57, %v3053_v17  ;;  %862 = vadd.xlane.f32.xlu1 %v861_v48  ;;  %v1102_v27 = vadd.f32 %v2832_v37, %v988_v47 }
 0x1f4   :  { %v1096_v56 = vadd.f32 %v1095_v36, %v1094_v11  ;;  %v1104_v8 = vsel %vm787_vm3, %v990_v33, 0.0 }
 0x1f5   :  { %889 = vadd.xlane.f32.xlu0 %v888_v21  ;;  %v1103_v20 = vadd.f32 %v1102_v27, %v989_v24  ;;  %v897_v1 = vadd.f32 %v896_v5, %v895_v50 }
 0x1f7   :  { %871 = vadd.xlane.f32.xlu1 %v870_v45  ;;  %v1105_v49 = vadd.f32 %v1104_v8, %v1103_v20 }
 0x1f9   :  { %1106 = vadd.xlane.f32.xlu0 %v1105_v49 }
 0x1fb   :  { %1079 = vadd.xlane.f32.xlu1 %v1078_v28 }
 0x1ff   :  { %880 = vadd.xlane.f32.xlu1 %v879_v61 }
 0x203   :  { %898 = vadd.xlane.f32.xlu1 %v897_v1 }
 0x207   :  { %1097 = vadd.xlane.f32.xlu1 %v1096_v56 }
 0x254   :  { %v791_v48 = vpop.xlane.xlu1 %790 }
 0x255   :  { %v1108_v37 = vmul.f32 0.0012755102, %v791_v48 }
 0x257   :  { %v1134_v53 = vmul.f32 %v1108_v37, %v1108_v37  ;;  %v999_v41 = vpop.xlane.xlu0 %998 }
 0x258   :  { %v1121_v22 = vmul.f32 0.0012755102, %v999_v41  ;;  %v800_v57 = vpop.xlane.xlu1 %799 }
 0x259   :  { %v1109_v47 = vmul.f32 0.0012755102, %v800_v57 }
 0x25a   :  { %v1147_v36 = vsub.f32 %v1121_v22, %v1134_v53 }
 0x25b   :  { %v1135_v50 = vmul.f32 %v1109_v47, %v1109_v47 }
 0x25c   :  { %v1160_v21 = vmax.f32 %v1147_v36, 0.0  ;;  %v1008_v24 = vpop.xlane.xlu1 %1007  ;;  %v809_v11 = vpop.xlane.xlu0 %808 }
 0x25d   :  { %v1122_v33 = vmul.f32 0.0012755102, %v1008_v24  ;;  %v3065_v45 = vmul.f32 0.0012755102, %v809_v11 }
 0x25e   :  { %v1173_v49 = vadd.f32 1e-05, %v1160_v21 }
 0x25f   :  { %v1148_v28 = vsub.f32 %v1122_v33, %v1135_v50  ;;  %v1136_v5 = vmul.f32 %v3065_v45, %v3065_v45  ;;  %v1199_v50 = vld [vmem:[%s3570_s5] sm:$0xff] }
 0x260   :  { %1915 = vrsqrt.f32 %v1173_v49  ;;  %v1017_v61 = vpop.xlane.xlu0 %1016  ;;  %v818_v8 = vpop.xlane.xlu1 %817 }
 0x261   :  { %v1161_v27 = vmax.f32 %v1148_v28, 0.0  ;;  %v1123_v56 = vmul.f32 0.0012755102, %v1017_v61  ;;  %v3069_v20 = vmul.f32 0.0012755102, %v818_v8 }
 0x263   :  { %v1174_v1 = vadd.f32 1e-05, %v1161_v27  ;;  %v1149_v48 = vsub.f32 %v1123_v56, %v1136_v5  ;;  %v1137_v22 = vmul.f32 %v3069_v20, %v3069_v20 }
 0x264   :  { %v1026_v53 = vpop.xlane.xlu1 %1025 }
 0x265   :  { %1917 = vrsqrt.f32 %v1174_v1  ;;  %v1162_v41 = vmax.f32 %v1149_v48, 0.0  ;;  %v1124_v57 = vmul.f32 0.0012755102, %v1026_v53  ;;  %v1225_v1 = vld [vmem:[%s3571_s6] sm:$0xff] }
 0x266   :  { %v1035_v24 = vpop.xlane.xlu0 %1034 }
 0x267   :  { %v1175_v36 = vadd.f32 1e-05, %v1162_v41  ;;  %v1150_v21 = vsub.f32 %v1124_v57, %v1137_v22  ;;  %v1125_v8 = vmul.f32 0.0012755102, %v1035_v24  ;;  %v1200_v22 = vld [vmem:[%s3570_s5 + $0x8] sm:$0xff] }
 0x268   :  { %v827_v11 = vpop.xlane.xlu1 %826 }
 0x269   :  { %1919 = vrsqrt.f32 %v1175_v36  ;;  %v1163_v33 = vmax.f32 %v1150_v21, 0.0  ;;  %v3076_v49 = vmul.f32 0.0012755102, %v827_v11 }
 0x26a   :  { %v1916_v28 = vpop.eup %1915 }
 0x26b   :  { %v1176_v61 = vadd.f32 1e-05, %v1163_v33  ;;  %v1138_v27 = vmul.f32 %v3076_v49, %v3076_v49  ;;  %v1212_v5 = vmul.f32 %v1916_v28, %v1199_v50 }
 0x26c   :  { %v836_v56 = vpop.xlane.xlu1 %835 }
 0x26d   :  { %1921 = vrsqrt.f32 %v1176_v61  ;;  %v1151_v48 = vsub.f32 %v1125_v8, %v1138_v27  ;;  %v3083_v53 = vmul.f32 0.0012755102, %v836_v56  ;;  %1266 = vperm.xlu1 %1910, %v1212_v5   ;;  %v1238_v41 = vmul.f32 %v1212_v5, %v1108_v37  ;;  %v1226_v61 = vld [vmem:[%s3571_s6 + $0x8] sm:$0xff]  ;;  %v1201_v37 = vld [vmem:[%s3570_s5 + $0x10] sm:$0xff] }
 0x26e   :  { %v1053_v56 = vpop.xlane.xlu0 %1052 }
 0x26f   :  { %v1918_v57 = vpop.eup %1917  ;;  %v1164_v36 = vmax.f32 %v1151_v48, 0.0  ;;  %v1251_v21 = vsub.f32 %v1225_v1, %v1238_v41  ;;  %v1139_v33 = vmul.f32 %v3083_v53, %v3083_v53 }
 0x270   :  { %v1044_v24 = vpop.xlane.xlu1 %1043  ;;  %v1213_v11 = vmul.f32 %v1918_v57, %v1200_v22 }
 0x271   :  { %v1177_v50 = vadd.f32 1e-05, %v1164_v36  ;;  %v1126_v28 = vmul.f32 0.0012755102, %v1044_v24  ;;  %1422 = vperm.xlu1 %1910, %v1251_v21   ;;  %v1202_v36 = vld [vmem:[%s3570_s5 + $0x18] sm:$0xff] }
 0x272   :  { %1271 = vperm.xlu0 %1909, %v1213_v11   ;;  %v1239_v8 = vmul.f32 %v1213_v11, %v1109_v47  ;;  %v1127_v24 = vmul.f32 0.0012755102, %v1053_v56 }
 0x273   :  { %v1920_v27 = vpop.eup %1919  ;;  %1923 = vrsqrt.f32 %v1177_v50  ;;  %v1152_v5 = vsub.f32 %v1126_v28, %v1139_v33 }
 0x274   :  { %v845_v1 = vpop.xlane.xlu1 %844  ;;  %v1252_v48 = vsub.f32 %v1226_v61, %v1239_v8  ;;  %v1214_v41 = vmul.f32 %v1920_v27, %v1201_v37  ;;  %v1227_v37 = vld [vmem:[%s3571_s6 + $0x10] sm:$0xff]  ;;  %v1203_v8 = vld [vmem:[%s3570_s5 + $0x20] sm:$0xff] }
 0x275   :  { %v1165_v22 = vmax.f32 %v1152_v5, 0.0  ;;  %v3096_v57 = vmul.f32 0.0012755102, %v845_v1 }
 0x276   :  { %1427 = vperm.xlu0 %1909, %v1252_v48   ;;  %1276 = vperm.xlu1 %1910, %v1214_v41   ;;  %v1240_v33 = vmul.f32 %v1214_v41, %v3065_v45 }
 0x277   :  { %v1922_v21 = vpop.eup %1921  ;;  %v1178_v35 = vadd.f32 1e-05, %v1165_v22  ;;  %v1140_v47 = vmul.f32 %v3096_v57, %v3096_v57 }
 0x278   :  { %v854_v11 = vpop.xlane.xlu1 %853  ;;  %v1215_v50 = vmul.f32 %v1922_v21, %v1202_v36  ;;  %v1253_v56 = vsub.f32 %v1227_v37, %v1240_v33  ;;  %v1228_v21 = vld [vmem:[%s3571_s6 + $0x18] sm:$0xff] }
 0x279   :  { %1925 = vrsqrt.f32 %v1178_v35  ;;  %v1153_v28 = vsub.f32 %v1127_v24, %v1140_v47  ;;  %v3104_v61 = vmul.f32 0.0012755102, %v854_v11  ;;  %v1071_v24 = vpop.xlane.xlu0 %1070 }
 0x27a   :  { %1281 = vperm.xlu1 %1910, %v1215_v50   ;;  %v1241_v22 = vmul.f32 %v1215_v50, %v3069_v20 }
 0x27b   :  { %v1166_v27 = vmax.f32 %v1153_v28, 0.0  ;;  %v1141_v35 = vmul.f32 %v3104_v61, %v3104_v61  ;;  %v1204_v28 = vld [vmem:[%s3570_s5 + $0x28] sm:$0xff] }
 0x27c   :  { %v1062_v5 = vpop.xlane.xlu1 %1061  ;;  %v1254_v37 = vsub.f32 %v1228_v21, %v1241_v22  ;;  %v1229_v22 = vld [vmem:[%s3571_s6 + $0x20] sm:$0xff] }
 0x27d   :  { %v1924_v1 = vpop.eup %1923  ;;  %v1179_v48 = vadd.f32 1e-05, %v1166_v27  ;;  %v1128_v45 = vmul.f32 0.0012755102, %v1062_v5  ;;  %v1129_v27 = vmul.f32 0.0012755102, %v1071_v24 }
 0x27e   :  { %v1216_v41 = vmul.f32 %v1924_v1, %v1203_v8  ;;  %1432 = vperm.xlu1 %1910, %v1253_v56   ;;  %v1089_v56 = vpop.xlane.xlu0 %1088 }
 0x27f   :  { %1927 = vrsqrt.f32 %v1179_v48  ;;  %v1154_v36 = vsub.f32 %v1128_v45, %v1141_v35 }
 0x280   :  { %v863_v47 = vpop.xlane.xlu1 %862  ;;  %1286 = vperm.xlu0 %1909, %v1216_v41   ;;  %v1242_v5 = vmul.f32 %v1216_v41, %v3076_v49 }
 0x281   :  { %v1167_v11 = vmax.f32 %v1154_v36, 0.0  ;;  %v3118_v33 = vmul.f32 0.0012755102, %v863_v47  ;;  %v1205_v36 = vld [vmem:[%s3570_s5 + $0x30] sm:$0xff] }
 0x282   :  { %v1255_v49 = vsub.f32 %v1229_v22, %v1242_v5  ;;  %v1206_v22 = vld [vmem:[%s3570_s5 + $0x38] sm:$0xff] }
 0x283   :  { %v1926_v8 = vpop.eup %1925  ;;  %v1180_v20 = vadd.f32 1e-05, %v1167_v11  ;;  %v1142_v50 = vmul.f32 %v3118_v33, %v3118_v33 }
 0x284   :  { %v872_v1 = vpop.xlane.xlu1 %871  ;;  %1437 = vperm.xlu0 %1909, %v1254_v37   ;;  %v1217_v48 = vmul.f32 %v1926_v8, %v1204_v28  ;;  %v890_v8 = vpop.xlane.xlu0 %889 }
 0x285   :  { %1929 = vrsqrt.f32 %v1180_v20  ;;  %v1155_v35 = vsub.f32 %v1129_v27, %v1142_v50  ;;  %v3126_v45 = vmul.f32 0.0012755102, %v872_v1  ;;  %v1230_v50 = vld [vmem:[%s3571_s6 + $0x28] sm:$0xff] }
 0x286   :  { %1291 = vperm.xlu1 %1910, %v1217_v48   ;;  %v1243_v27 = vmul.f32 %v1217_v48, %v3083_v53 }
 0x287   :  { %v1168_v21 = vmax.f32 %v1155_v35, 0.0  ;;  %v1143_v11 = vmul.f32 %v3126_v45, %v3126_v45 }
 0x288   :  { %v1080_v24 = vpop.xlane.xlu1 %1079 }
 0x289   :  { %v1928_v41 = vpop.eup %1927  ;;  %v1181_v47 = vadd.f32 1e-05, %v1168_v21  ;;  %v1130_v28 = vmul.f32 0.0012755102, %v1080_v24  ;;  %v1131_v24 = vmul.f32 0.0012755102, %v1089_v56 }
 0x28a   :  { %v1218_v37 = vmul.f32 %v1928_v41, %v1205_v36  ;;  %1442 = vperm.xlu1 %1910, %v1255_v49   ;;  %v1256_v36 = vsub.f32 %v1230_v50, %v1243_v27  ;;  %v1107_v41 = vpop.xlane.xlu0 %1106  ;;  %v1231_v27 = vld [vmem:[%s3571_s6 + $0x30] sm:$0xff]  ;;  %v1207_v56 = vld [vmem:[%s3570_s5 + $0x40] sm:$0xff] }
 0x28b   :  { %1931 = vrsqrt.f32 %v1181_v47  ;;  %v1156_v20 = vsub.f32 %v1130_v28, %v1143_v11  ;;  %v1119_v28 = vmul.f32 0.0012755102, %v890_v8  ;;  %v1133_v50 = vmul.f32 0.0012755102, %v1107_v41  ;;  %v1232_v41 = vld [vmem:[%s3571_s6 + $0x38] sm:$0xff] }
 0x28c   :  { %v881_v1 = vpop.xlane.xlu1 %880  ;;  %1296 = vperm.xlu0 %1909, %v1218_v37   ;;  %v1244_v48 = vmul.f32 %v1218_v37, %v3096_v57 }
 0x28d   :  { %v1169_v5 = vmax.f32 %v1156_v20, 0.0  ;;  %v3140_v35 = vmul.f32 0.0012755102, %v881_v1 }
 0x28f   :  { %v1930_v21 = vpop.eup %1929  ;;  %v1182_v49 = vadd.f32 1e-05, %v1169_v5  ;;  %v1144_v53 = vmul.f32 %v3140_v35, %v3140_v35 }
 0x290   :  { %1447 = vperm.xlu0 %1909, %v1256_v36   ;;  %v899_v47 = vpop.xlane.xlu1 %898  ;;  %v1219_v11 = vmul.f32 %v1930_v21, %v1206_v22  ;;  %v1257_v36 = vsub.f32 %v1231_v27, %v1244_v48  ;;  %v1145_v22 = vmul.f32 %v1119_v28, %v1119_v28  ;;  %v1208_v48 = vld [vmem:[%s3570_s5 + $0x48] sm:$0xff] }
 0x291   :  { %1933 = vrsqrt.f32 %v1182_v49  ;;  %v1157_v20 = vsub.f32 %v1131_v24, %v1144_v53  ;;  %v1120_v1 = vmul.f32 0.0012755102, %v899_v47 }
 0x292   :  { %1301 = vperm.xlu1 %1910, %v1219_v11   ;;  %v1245_v53 = vmul.f32 %v1219_v11, %v3104_v61 }
 0x293   :  { %v1170_v5 = vmax.f32 %v1157_v20, 0.0  ;;  %v1146_v57 = vmul.f32 %v1120_v1, %v1120_v1 }
 0x294   :  { %v1098_v37 = vpop.xlane.xlu1 %1097  ;;  %v1258_v27 = vsub.f32 %v1232_v41, %v1245_v53 }
 0x295   :  { %v1932_v17 = vpop.eup %1931  ;;  %v1183_v8 = vadd.f32 1e-05, %v1170_v5  ;;  %v1159_v21 = vsub.f32 %v1133_v50, %v1146_v57  ;;  %v1132_v24 = vmul.f32 0.0012755102, %v1098_v37 }
 0x296   :  { %v1220_v49 = vmul.f32 %v1932_v17, %v1207_v56  ;;  %1452 = vperm.xlu1 %1910, %v1257_v36   ;;  %v1233_v56 = vld [vmem:[%s3571_s6 + $0x40] sm:$0xff] }
 0x297   :  { %1935 = vrsqrt.f32 %v1183_v8  ;;  %v1172_v47 = vmax.f32 %v1159_v21, 0.0  ;;  %v1158_v23 = vsub.f32 %v1132_v24, %v1145_v22  ;;  %v1211_v22 = vld [vmem:[%s3570_s5 + $0x60] sm:$0xff]  ;;  %v1210_v8 = vld [vmem:[%s3570_s5 + $0x58] sm:$0xff] }
 0x298   :  { %1306 = vperm.xlu0 %1909, %v1220_v49   ;;  %v1246_v61 = vmul.f32 %v1220_v49, %v3118_v33  ;;  %v1234_v33 = vld [vmem:[%s3571_s6 + $0x48] sm:$0xff] }
 0x299   :  { %v1185_v20 = vadd.f32 1e-05, %v1172_v47  ;;  %v1171_v16 = vmax.f32 %v1158_v23, 0.0  ;;  %v1209_v23 = vld [vmem:[%s3570_s5 + $0x50] sm:$0xff] }
 0x29a   :  { %v1259_v5 = vsub.f32 %v1233_v56, %v1246_v61  ;;  %v1235_v47 = vld [vmem:[%s3571_s6 + $0x50] sm:$0xff] }
 0x29b   :  { %v1934_v50 = vpop.eup %1933  ;;  %1937 = vrsqrt.f32 %v1185_v20  ;;  %v1184_v17 = vadd.f32 1e-05, %v1171_v16  ;;  %v1236_v20 = vld [vmem:[%s3571_s6 + $0x58] sm:$0xff] }
 0x29c   :  { %1457 = vperm.xlu0 %1909, %v1258_v27   ;;  %v1221_v11 = vmul.f32 %v1934_v50, %v1208_v48 }
 0x29d   :  { %1939 = vrsqrt.f32 %v1184_v17 }
 0x29e   :  { %1311 = vperm.xlu1 %1910, %v1221_v11   ;;  %v1247_v16 = vmul.f32 %v1221_v11, %v3126_v45 }
 0x2a0   :  { %v1260_v21 = vsub.f32 %v1234_v33, %v1247_v16 }
 0x2a1   :  { %v1936_v57 = vpop.eup %1935 }
 0x2a2   :  { %v1222_v37 = vmul.f32 %v1936_v57, %v1209_v23  ;;  %1462 = vperm.xlu1 %1910, %v1259_v5  }
 0x2a4   :  { %1316 = vperm.xlu0 %1909, %v1222_v37   ;;  %v1248_v49 = vmul.f32 %v1222_v37, %v3140_v35  ;;  %v1237_v35 = vld [vmem:[%s3571_s6 + $0x60] sm:$0xff] }
 0x2a5   :  { %v1938_v36 = vpop.eup %1937 }
 0x2a6   :  { %v1224_v53 = vmul.f32 %v1938_v36, %v1211_v22  ;;  %v1261_v27 = vsub.f32 %v1235_v47, %v1248_v49 }
 0x2a7   :  { %v1940_v24 = vpop.eup %1939 }
 0x2a8   :  { %1467 = vperm.xlu0 %1909, %v1260_v21   ;;  %v1223_v45 = vmul.f32 %v1940_v24, %v1210_v8  ;;  %v1250_v48 = vmul.f32 %v1224_v53, %v1120_v1 }
 0x2aa   :  { %1321 = vperm.xlu1 %1910, %v1223_v45   ;;  %v1249_v41 = vmul.f32 %v1223_v45, %v1119_v28  ;;  %v1263_v17 = vsub.f32 %v1237_v35, %v1250_v48 }
 0x2ac   :  { %1326 = vperm.xlu0 %1909, %v1224_v53   ;;  %v1262_v50 = vsub.f32 %v1236_v20, %v1249_v41 }
 0x2ae   :  { %1472 = vperm.xlu1 %1910, %v1261_v27  }
 0x2b0   :  { %1477 = vperm.xlu0 %1909, %v1262_v50  }
 0x2b2   :  { %1482 = vperm.xlu1 %1910, %v1263_v17  }
 0x2ec   :  { %v1267_v61 = vpop.permute.xlu1 %1266 }
 0x2ed   :  { %v1329_v11 = vmul.f32 %v1267_v61, %v2506_v51  ;;  %v1330_v28 = vmul.f32 %v1267_v61, %v2512_v3  ;;  %v1331_v56 = vmul.f32 %v1267_v61, %v2508_v55  ;;  %v1332_v1 = vmul.f32 %v1267_v61, %v2514_v4 }
 0x2ee   :  { %v1333_v23 = vmul.f32 %v1267_v61, %v2811_v12  ;;  %v1334_v5 = vmul.f32 %v1267_v61, %v2819_v7  ;;  %v1335_v57 = vmul.f32 %v1267_v61, %v2813_v6 }
 0x2f0   :  { %v1423_v37 = vpop.permute.xlu1 %1422 }
 0x2f1   :  { %v1485_v16 = vadd.f32 %v1423_v37, %v1329_v11  ;;  %v1486_v33 = vadd.f32 %v1423_v37, %v1330_v28  ;;  %v1487_v36 = vadd.f32 %v1423_v37, %v1331_v56  ;;  %v1488_v22 = vadd.f32 %v1423_v37, %v1332_v1  ;;  %v1272_v8 = vpop.permute.xlu0 %1271 }
 0x2f2   :  { %v1489_v21 = vadd.f32 %v1423_v37, %v1333_v23  ;;  %v1490_v51 = vadd.f32 %v1423_v37, %v1334_v5  ;;  %v1491_v24 = vadd.f32 %v1423_v37, %v1335_v57  ;;  %v1336_v55 = vmul.f32 %v1272_v8, %v2523_v9 }
 0x2f3   :  { %1576 = vst [vmem:[%s3572_s7] sm:$0xff] %v1485_v16  ;;  %1577 = vst [vmem:[%s3572_s7 + $0x8] sm:$0xff] %v1486_v33  ;;  %v1337_v3 = vmul.f32 %v1272_v8, %v2531_v13  ;;  %v1338_v4 = vmul.f32 %v1272_v8, %v2525_v10  ;;  %v1339_v6 = vmul.f32 %v1272_v8, %v2533_v14 }
 0x2f4   :  { %1578 = vst [vmem:[%s3572_s7 + $0x10] sm:$0xff] %v1487_v36  ;;  %1579 = vst [vmem:[%s3572_s7 + $0x18] sm:$0xff] %v1488_v22  ;;  %v1340_v12 = vmul.f32 %v1272_v8, %v2834_v46  ;;  %v1341_v7 = vmul.f32 %v1272_v8, %v2844_v62  ;;  %v1342_v49 = vmul.f32 %v1272_v8, %v2836_v18 }
 0x2f5   :  { %1580 = vst [vmem:[%s3572_s7 + $0x20] sm:$0xff] %v1489_v21  ;;  %1581 = vst [vmem:[%s3572_s7 + $0x28] sm:$0xff] %v1490_v51  ;;  %v1428_v53 = vpop.permute.xlu0 %1427  ;;  %v1277_v45 = vpop.permute.xlu1 %1276 }
 0x2f6   :  { %1582 = vst.msk [vmem:[%s3572_s7 + $0x30] sm:$0xff] %vm787_vm3, %v1491_v24  ;;  %v1492_v47 = vadd.f32 %v1428_v53, %v1336_v55  ;;  %v1493_v41 = vadd.f32 %v1428_v53, %v1337_v3  ;;  %v1494_v20 = vadd.f32 %v1428_v53, %v1338_v4  ;;  %v1495_v48 = vadd.f32 %v1428_v53, %v1339_v6  ;;  %v3685_v4 = vld [vmem:[#allocation5_spill] sm:$0xff] }
 0x2f7   :  { %v1496_v27 = vadd.f32 %v1428_v53, %v1340_v12  ;;  %v1497_v9 = vadd.f32 %v1428_v53, %v1341_v7  ;;  %v1498_v35 = vadd.f32 %v1428_v53, %v1342_v49  ;;  %v1343_v13 = vmul.f32 %v1277_v45, %v2547_v25  ;;  %v3686_v12 = vld [vmem:[#allocation39_spill] sm:$0xff] }
 0x2f8   :  { %1583 = vst [vmem:[%s3572_s7 + $0x38] sm:$0xff] %v1492_v47  ;;  %1584 = vst [vmem:[%s3572_s7 + $0x40] sm:$0xff] %v1493_v41  ;;  %v1344_v14 = vmul.f32 %v1277_v45, %v2555_v29  ;;  %v1345_v62 = vmul.f32 %v1277_v45, %v2549_v26  ;;  %v1346_v46 = vmul.f32 %v1277_v45, %v2557_v30 }
 0x2f9   :  { %1585 = vst [vmem:[%s3572_s7 + $0x48] sm:$0xff] %v1494_v20  ;;  %1586 = vst [vmem:[%s3572_s7 + $0x50] sm:$0xff] %v1495_v48  ;;  %v1282_v10 = vpop.permute.xlu1 %1281  ;;  %v1347_v18 = vmul.f32 %v1277_v45, %v2853_v59  ;;  %v1348_v50 = vmul.f32 %v1277_v45, %v2863_v52  ;;  %v1349_v17 = vmul.f32 %v1277_v45, %v2855_v54  ;;  %v3681_v59 = vld [vmem:[#allocation38_spill] sm:$0xff] }
 0x2fa   :  { %1587 = vst [vmem:[%s3572_s7 + $0x58] sm:$0xff] %v1496_v27  ;;  %1588 = vst [vmem:[%s3572_s7 + $0x60] sm:$0xff] %v1497_v9  ;;  %v1350_v26 = vmul.f32 %v1282_v10, %v2571_v39  ;;  %v1351_v29 = vmul.f32 %v1282_v10, %v2579_v43  ;;  %v1352_v30 = vmul.f32 %v1282_v10, %v2573_v40  ;;  %v3682_v40 = vld [vmem:[#allocation2_spill] sm:$0xff] }
 0x2fb   :  { %1589 = vst.msk [vmem:[%s3572_s7 + $0x68] sm:$0xff] %vm787_vm3, %v1498_v35  ;;  %v1353_v54 = vmul.f32 %v1282_v10, %v2581_v44  ;;  %v1354_v52 = vmul.f32 %v1282_v10, %v3681_v59  ;;  %v1355_v37 = vmul.f32 %v1282_v10, %v2882_v32  ;;  %v1356_v16 = vmul.f32 %v1282_v10, %v2874_v2  ;;  %v3683_v44 = vld [vmem:[#allocation4_spill] sm:$0xff]  ;;  %v3684_v32 = vld [vmem:[#allocation3_spill] sm:$0xff] }
 0x2fd   :  { %v1433_v61 = vpop.permute.xlu1 %1432 }
 0x2fe   :  { %v1499_v11 = vadd.f32 %v1433_v61, %v1343_v13  ;;  %v1500_v28 = vadd.f32 %v1433_v61, %v1344_v14  ;;  %v1501_v56 = vadd.f32 %v1433_v61, %v1345_v62  ;;  %v1502_v1 = vadd.f32 %v1433_v61, %v1346_v46  ;;  %v3688_v13 = vld [vmem:[#allocation8_spill] sm:$0xff]  ;;  %v3689_v62 = vld [vmem:[#allocation7_spill] sm:$0xff] }
 0x2ff   :  { %v1503_v23 = vadd.f32 %v1433_v61, %v1347_v18  ;;  %v1504_v5 = vadd.f32 %v1433_v61, %v1348_v50  ;;  %v1505_v25 = vadd.f32 %v1433_v61, %v1349_v17  ;;  %v1287_v57 = vpop.permute.xlu0 %1286  ;;  %v3690_v18 = vld [vmem:[#allocation9_spill] sm:$0xff] }
 0x300   :  { %1590 = vst [vmem:[%s3572_s7 + $0x70] sm:$0xff] %v1499_v11  ;;  %1591 = vst [vmem:[%s3572_s7 + $0x78] sm:$0xff] %v1500_v28  ;;  %v1357_v43 = vmul.f32 %v1287_v57, %v3682_v40  ;;  %v1358_v2 = vmul.f32 %v1287_v57, %v3683_v44  ;;  %v1359_v3 = vmul.f32 %v1287_v57, %v3684_v32  ;;  %v3691_v61 = vld [vmem:[#allocation41_spill] sm:$0xff]  ;;  %v3692_v28 = vld [vmem:[#allocation40_spill] sm:$0xff] }
 0x301   :  { %1592 = vst [vmem:[%s3572_s7 + $0x80] sm:$0xff] %v1501_v56  ;;  %1593 = vst [vmem:[%s3572_s7 + $0x88] sm:$0xff] %v1502_v1  ;;  %v1360_v6 = vmul.f32 %v1287_v57, %v3685_v4  ;;  %v1361_v7 = vmul.f32 %v1287_v57, %v3686_v12  ;;  %v1362_v49 = vmul.f32 %v1287_v57, %v2901_v19 }
 0x302   :  { %1594 = vst [vmem:[%s3572_s7 + $0x90] sm:$0xff] %v1503_v23  ;;  %1595 = vst [vmem:[%s3572_s7 + $0x98] sm:$0xff] %v1504_v5  ;;  %v1363_v53 = vmul.f32 %v1287_v57, %v2893_v58  ;;  %v3687_v58 = vld [vmem:[#allocation6_spill] sm:$0xff] }
 0x303   :  { %1596 = vst.msk [vmem:[%s3572_s7 + $0xa0] sm:$0xff] %vm787_vm3, %v1505_v25  ;;  %v1438_v33 = vpop.permute.xlu0 %1437 }
 0x304   :  { %v1506_v36 = vadd.f32 %v1438_v33, %v1350_v26  ;;  %v1507_v22 = vadd.f32 %v1438_v33, %v1351_v29  ;;  %v1508_v8 = vadd.f32 %v1438_v33, %v1352_v30  ;;  %v1509_v21 = vadd.f32 %v1438_v33, %v1353_v54 }
 0x305   :  { %v1510_v51 = vadd.f32 %v1438_v33, %v1354_v52  ;;  %v1511_v24 = vadd.f32 %v1438_v33, %v1355_v37  ;;  %v1512_v39 = vadd.f32 %v1438_v33, %v1356_v16  ;;  %v1292_v55 = vpop.permute.xlu1 %1291  ;;  %v3694_v52 = vld [vmem:[#allocation12_spill] sm:$0xff]  ;;  %v3695_v16 = vld [vmem:[#allocation11_spill] sm:$0xff] }
 0x306   :  { %1597 = vst [vmem:[%s3572_s7 + $0xa8] sm:$0xff] %v1506_v36  ;;  %1598 = vst [vmem:[%s3572_s7 + $0xb0] sm:$0xff] %v1507_v22  ;;  %v1364_v19 = vmul.f32 %v1292_v55, %v3687_v58  ;;  %v1365_v14 = vmul.f32 %v1292_v55, %v3688_v13  ;;  %v1366_v46 = vmul.f32 %v1292_v55, %v3689_v62  ;;  %v3696_v36 = vld [vmem:[#allocation13_spill] sm:$0xff] }
 0x307   :  { %1599 = vst [vmem:[%s3572_s7 + $0xb8] sm:$0xff] %v1508_v8  ;;  %1600 = vst [vmem:[%s3572_s7 + $0xc0] sm:$0xff] %v1509_v21  ;;  %v1367_v50 = vmul.f32 %v1292_v55, %v3690_v18  ;;  %v1368_v17 = vmul.f32 %v1292_v55, %v2910_v38  ;;  %v1369_v11 = vmul.f32 %v1292_v55, %v3691_v61  ;;  %v3693_v38 = vld [vmem:[#allocation10_spill] sm:$0xff]  ;;  %v3706_v61 = vld [vmem:[#allocation19_spill] sm:$0xff] }
 0x308   :  { %1601 = vst [vmem:[%s3572_s7 + $0xc8] sm:$0xff] %v1510_v51  ;;  %1602 = vst [vmem:[%s3572_s7 + $0xd0] sm:$0xff] %v1511_v24  ;;  %v1370_v56 = vmul.f32 %v1292_v55, %v3692_v28  ;;  %v3697_v8 = vld [vmem:[#allocation42_spill] sm:$0xff]  ;;  %v3707_v28 = vld [vmem:[#allocation21_spill] sm:$0xff] }
 0x309   :  { %1603 = vst.msk [vmem:[%s3572_s7 + $0xd8] sm:$0xff] %vm787_vm3, %v1512_v39  ;;  %v1443_v45 = vpop.permute.xlu1 %1442 }
 0x30a   :  { %v1513_v47 = vadd.f32 %v1443_v45, %v1357_v43  ;;  %v1514_v41 = vadd.f32 %v1443_v45, %v1358_v2  ;;  %v1515_v20 = vadd.f32 %v1443_v45, %v1359_v3  ;;  %v1516_v48 = vadd.f32 %v1443_v45, %v1360_v6  ;;  %v3699_v6 = vld [vmem:[#allocation16_spill] sm:$0xff] }
 0x30b   :  { %v1517_v27 = vadd.f32 %v1443_v45, %v1361_v7  ;;  %v1518_v9 = vadd.f32 %v1443_v45, %v1362_v49  ;;  %v1519_v35 = vadd.f32 %v1443_v45, %v1363_v53  ;;  %v1297_v10 = vpop.permute.xlu0 %1296  ;;  %v3700_v7 = vld [vmem:[#allocation15_spill] sm:$0xff]  ;;  %v3701_v53 = vld [vmem:[#allocation17_spill] sm:$0xff] }
 0x30c   :  { %1604 = vst [vmem:[%s3572_s7 + $0xe0] sm:$0xff] %v1513_v47  ;;  %1605 = vst [vmem:[%s3572_s7 + $0xe8] sm:$0xff] %v1514_v41  ;;  %v1371_v59 = vmul.f32 %v1297_v10, %v3693_v38  ;;  %v1372_v37 = vmul.f32 %v1297_v10, %v3694_v52  ;;  %v1373_v33 = vmul.f32 %v1297_v10, %v3695_v16  ;;  %v3702_v41 = vld [vmem:[#allocation44_spill] sm:$0xff] }
 0x30d   :  { %1606 = vst [vmem:[%s3572_s7 + $0xf0] sm:$0xff] %v1515_v20  ;;  %1607 = vst [vmem:[%s3572_s7 + $0xf8] sm:$0xff] %v1516_v48  ;;  %v1374_v22 = vmul.f32 %v1297_v10, %v3696_v36  ;;  %v1375_v21 = vmul.f32 %v1297_v10, %v3697_v8  ;;  %v1376_v51 = vmul.f32 %v1297_v10, %v2939_v60  ;;  %v3703_v48 = vld [vmem:[#allocation43_spill] sm:$0xff]  ;;  %v3710_v16 = vld [vmem:[#allocation24_spill] sm:$0xff] }
 0x30e   :  { %1608 = vst [vmem:[%s3572_s7 + $0x100] sm:$0xff] %v1517_v27  ;;  %1609 = vst [vmem:[%s3572_s7 + $0x108] sm:$0xff] %v1518_v9  ;;  %v1377_v24 = vmul.f32 %v1297_v10, %v2931_v31  ;;  %v3698_v31 = vld [vmem:[#allocation14_spill] sm:$0xff]  ;;  %v3711_v36 = vld [vmem:[#allocation23_spill] sm:$0xff] }
 0x30f   :  { %1610 = vst.msk [vmem:[%s3572_s7 + $0x110] sm:$0xff] %vm787_vm3, %v1519_v35  ;;  %v1448_v1 = vpop.permute.xlu0 %1447  ;;  %v3712_v8 = vld [vmem:[#allocation25_spill] sm:$0xff] }
 0x310   :  { %v1520_v23 = vadd.f32 %v1448_v1, %v1364_v19  ;;  %v1521_v5 = vadd.f32 %v1448_v1, %v1365_v14  ;;  %v1522_v25 = vadd.f32 %v1448_v1, %v1366_v46  ;;  %v1523_v57 = vadd.f32 %v1448_v1, %v1367_v50  ;;  %v3705_v50 = vld [vmem:[#allocation20_spill] sm:$0xff] }
 0x311   :  { %v1524_v26 = vadd.f32 %v1448_v1, %v1368_v17  ;;  %v1525_v29 = vadd.f32 %v1448_v1, %v1369_v11  ;;  %v1526_v30 = vadd.f32 %v1448_v1, %v1370_v56  ;;  %v1302_v54 = vpop.permute.xlu1 %1301  ;;  %v3708_v1 = vld [vmem:[#allocation45_spill] sm:$0xff] }
 0x312   :  { %1611 = vst [vmem:[%s3572_s7 + $0x118] sm:$0xff] %v1520_v23  ;;  %1612 = vst [vmem:[%s3572_s7 + $0x120] sm:$0xff] %v1521_v5  ;;  %v1378_v60 = vmul.f32 %v1302_v54, %v3698_v31  ;;  %v1379_v12 = vmul.f32 %v1302_v54, %v3699_v6  ;;  %v1380_v49 = vmul.f32 %v1302_v54, %v3700_v7 }
 0x313   :  { %1613 = vst [vmem:[%s3572_s7 + $0x128] sm:$0xff] %v1522_v25  ;;  %1614 = vst [vmem:[%s3572_s7 + $0x130] sm:$0xff] %v1523_v57  ;;  %v1381_v45 = vmul.f32 %v1302_v54, %v3701_v53  ;;  %v1382_v47 = vmul.f32 %v1302_v54, %v2948_v34  ;;  %v1383_v20 = vmul.f32 %v1302_v54, %v3702_v41  ;;  %v3704_v34 = vld [vmem:[#allocation18_spill] sm:$0xff] }
 0x314   :  { %1615 = vst [vmem:[%s3572_s7 + $0x138] sm:$0xff] %v1524_v26  ;;  %1616 = vst [vmem:[%s3572_s7 + $0x140] sm:$0xff] %v1525_v29  ;;  %v1384_v27 = vmul.f32 %v1302_v54, %v3703_v48 }
 0x315   :  { %1617 = vst.msk [vmem:[%s3572_s7 + $0x148] sm:$0xff] %vm787_vm3, %v1526_v30  ;;  %v1453_v39 = vpop.permute.xlu1 %1452 }
 0x316   :  { %v1527_v55 = vadd.f32 %v1453_v39, %v1371_v59  ;;  %v1528_v40 = vadd.f32 %v1453_v39, %v1372_v37  ;;  %v1529_v43 = vadd.f32 %v1453_v39, %v1373_v33  ;;  %v1530_v44 = vadd.f32 %v1453_v39, %v1374_v22 }
 0x317   :  { %v1531_v2 = vadd.f32 %v1453_v39, %v1375_v21  ;;  %v1532_v32 = vadd.f32 %v1453_v39, %v1376_v51  ;;  %v1533_v3 = vadd.f32 %v1453_v39, %v1377_v24  ;;  %v1307_v4 = vpop.permute.xlu0 %1306  ;;  %v3713_v24 = vld [vmem:[#allocation47_spill] sm:$0xff] }
 0x318   :  { %1618 = vst [vmem:[%s3572_s7 + $0x150] sm:$0xff] %v1527_v55  ;;  %1619 = vst [vmem:[%s3572_s7 + $0x158] sm:$0xff] %v1528_v40  ;;  %v1385_v18 = vmul.f32 %v1307_v4, %v3704_v34  ;;  %v1386_v17 = vmul.f32 %v1307_v4, %v3705_v50  ;;  %v1387_v11 = vmul.f32 %v1307_v4, %v3706_v61  ;;  %v3714_v55 = vld [vmem:[#allocation46_spill] sm:$0xff] }
 0x319   :  { %1620 = vst [vmem:[%s3572_s7 + $0x160] sm:$0xff] %v1529_v43  ;;  %1621 = vst [vmem:[%s3572_s7 + $0x168] sm:$0xff] %v1530_v44  ;;  %v1388_v56 = vmul.f32 %v1307_v4, %v3707_v28  ;;  %v1389_v23 = vmul.f32 %v1307_v4, %v3708_v1  ;;  %v1390_v5 = vmul.f32 %v1307_v4, %v2977_v63  ;;  %v3715_v43 = vld [vmem:[#allocation26_spill] sm:$0xff] }
 0x31a   :  { %1622 = vst [vmem:[%s3572_s7 + $0x170] sm:$0xff] %v1531_v2  ;;  %1623 = vst [vmem:[%s3572_s7 + $0x178] sm:$0xff] %v1532_v32  ;;  %v1391_v25 = vmul.f32 %v1307_v4, %v2969_v42  ;;  %v3709_v42 = vld [vmem:[#allocation22_spill] sm:$0xff]  ;;  %v3716_v2 = vld [vmem:[#allocation28_spill] sm:$0xff] }
 0x31b   :  { %1624 = vst.msk [vmem:[%s3572_s7 + $0x180] sm:$0xff] %vm787_vm3, %v1533_v3  ;;  %v1458_v9 = vpop.permute.xlu0 %1457 }
 0x31c   :  { %v1534_v35 = vadd.f32 %v1458_v9, %v1378_v60  ;;  %v1535_v10 = vadd.f32 %v1458_v9, %v1379_v12  ;;  %v1536_v58 = vadd.f32 %v1458_v9, %v1380_v49  ;;  %v1537_v19 = vadd.f32 %v1458_v9, %v1381_v45  ;;  %v3717_v12 = vld [vmem:[#allocation27_spill] sm:$0xff] }
 0x31d   :  { %v1538_v13 = vadd.f32 %v1458_v9, %v1382_v47  ;;  %v1539_v14 = vadd.f32 %v1458_v9, %v1383_v20  ;;  %v1540_v62 = vadd.f32 %v1458_v9, %v1384_v27  ;;  %v1312_v46 = vpop.permute.xlu1 %1311  ;;  %v3719_v20 = vld [vmem:[#allocation48_spill] sm:$0xff]  ;;  %v3720_v9 = vld [vmem:[#allocation49_spill] sm:$0xff] }
 0x31e   :  { %1625 = vst [vmem:[%s3572_s7 + $0x188] sm:$0xff] %v1534_v35  ;;  %1626 = vst [vmem:[%s3572_s7 + $0x190] sm:$0xff] %v1535_v10  ;;  %v1392_v63 = vmul.f32 %v1312_v46, %v3709_v42  ;;  %v1393_v33 = vmul.f32 %v1312_v46, %v3710_v16  ;;  %v1394_v22 = vmul.f32 %v1312_v46, %v3711_v36  ;;  %v3721_v10 = vld [vmem:[#allocation30_spill] sm:$0xff] }
 0x31f   :  { %1627 = vst [vmem:[%s3572_s7 + $0x198] sm:$0xff] %v1536_v58  ;;  %1628 = vst [vmem:[%s3572_s7 + $0x1a0] sm:$0xff] %v1537_v19  ;;  %v1395_v21 = vmul.f32 %v1312_v46, %v3712_v8  ;;  %v1396_v51 = vmul.f32 %v1312_v46, %v2986_v15  ;;  %v1397_v39 = vmul.f32 %v1312_v46, %v3713_v24  ;;  %v3718_v15 = vld [vmem:[#allocation29_spill] sm:$0xff]  ;;  %v3722_v19 = vld [vmem:[#allocation32_spill] sm:$0xff] }
 0x320   :  { %1629 = vst [vmem:[%s3572_s7 + $0x1a8] sm:$0xff] %v1538_v13  ;;  %1630 = vst [vmem:[%s3572_s7 + $0x1b0] sm:$0xff] %v1539_v14  ;;  %v1398_v40 = vmul.f32 %v1312_v46, %v3714_v55  ;;  %v3723_v14 = vld [vmem:[#allocation31_spill] sm:$0xff]  ;;  %v3724_v46 = vld [vmem:[#allocation33_spill] sm:$0xff] }
 0x321   :  { %1631 = vst.msk [vmem:[%s3572_s7 + $0x1b8] sm:$0xff] %vm787_vm3, %v1540_v62  ;;  %v1463_v57 = vpop.permute.xlu1 %1462 }
 0x322   :  { %v1541_v26 = vadd.f32 %v1463_v57, %v1385_v18  ;;  %v1542_v29 = vadd.f32 %v1463_v57, %v1386_v17  ;;  %v1543_v30 = vadd.f32 %v1463_v57, %v1387_v11  ;;  %v1544_v54 = vadd.f32 %v1463_v57, %v1388_v56  ;;  %v3725_v18 = vld [vmem:[#allocation50_spill] sm:$0xff]  ;;  %v3726_v17 = vld [vmem:[#allocation52_spill] sm:$0xff]  ;;  %v3727_v11 = vld [vmem:[#allocation51_spill] sm:$0xff] }
 0x323   :  { %v1545_v38 = vadd.f32 %v1463_v57, %v1389_v23  ;;  %v1546_v59 = vadd.f32 %v1463_v57, %v1390_v5  ;;  %v1547_v52 = vadd.f32 %v1463_v57, %v1391_v25  ;;  %v1317_v37 = vpop.permute.xlu0 %1316  ;;  %v3728_v56 = vld [vmem:[#allocation34_spill] sm:$0xff]  ;;  %v3729_v5 = vld [vmem:[#allocation36_spill] sm:$0xff]  ;;  %v3730_v57 = vld [vmem:[#allocation35_spill] sm:$0xff] }
 0x324   :  { %1632 = vst [vmem:[%s3572_s7 + $0x1c0] sm:$0xff] %v1541_v26  ;;  %1633 = vst [vmem:[%s3572_s7 + $0x1c8] sm:$0xff] %v1542_v29  ;;  %v1399_v44 = vmul.f32 %v1317_v37, %v3715_v43  ;;  %v1400_v32 = vmul.f32 %v1317_v37, %v3716_v2  ;;  %v1401_v7 = vmul.f32 %v1317_v37, %v3717_v12  ;;  %v3731_v29 = vld [vmem:[#allocation37_spill] sm:$0xff] }
 0x325   :  { %1634 = vst [vmem:[%s3572_s7 + $0x1d0] sm:$0xff] %v1543_v30  ;;  %1635 = vst [vmem:[%s3572_s7 + $0x1d8] sm:$0xff] %v1544_v54  ;;  %v1402_v41 = vmul.f32 %v1317_v37, %v3718_v15  ;;  %v1403_v48 = vmul.f32 %v1317_v37, %v3719_v20  ;;  %v1404_v27 = vmul.f32 %v1317_v37, %v3015_v0  ;;  %v3732_v54 = vld [vmem:[#allocation53_spill] sm:$0xff] }
 0x326   :  { %1636 = vst [vmem:[%s3572_s7 + $0x1e0] sm:$0xff] %v1545_v38  ;;  %1637 = vst [vmem:[%s3572_s7 + $0x1e8] sm:$0xff] %v1546_v59  ;;  %v1405_v35 = vmul.f32 %v1317_v37, %v3720_v9 }
 0x327   :  { %1638 = vst.msk [vmem:[%s3572_s7 + $0x1f0] sm:$0xff] %vm787_vm3, %v1547_v52  ;;  %v1468_v3 = vpop.permute.xlu0 %1467 }
 0x328   :  { %v1548_v4 = vadd.f32 %v1468_v3, %v1392_v63  ;;  %v1549_v31 = vadd.f32 %v1468_v3, %v1393_v33  ;;  %v1550_v60 = vadd.f32 %v1468_v3, %v1394_v22  ;;  %v1551_v6 = vadd.f32 %v1468_v3, %v1395_v21  ;;  %v3733_v22 = vld [vmem:[#allocation55_spill] sm:$0xff] }
 0x329   :  { %v1552_v49 = vadd.f32 %v1468_v3, %v1396_v51  ;;  %v1553_v53 = vadd.f32 %v1468_v3, %v1397_v39  ;;  %v1554_v45 = vadd.f32 %v1468_v3, %v1398_v40  ;;  %v1322_v47 = vpop.permute.xlu1 %1321 }
 0x32a   :  { %1639 = vst [vmem:[%s3572_s7 + $0x1f8] sm:$0xff] %v1548_v4  ;;  %1640 = vst [vmem:[%s3572_s7 + $0x200] sm:$0xff] %v1549_v31  ;;  %v1406_v58 = vmul.f32 %v1322_v47, %v3721_v10  ;;  %v1407_v13 = vmul.f32 %v1322_v47, %v3722_v19  ;;  %v1408_v62 = vmul.f32 %v1322_v47, %v3723_v14 }
 0x32b   :  { %1641 = vst [vmem:[%s3572_s7 + $0x208] sm:$0xff] %v1550_v60  ;;  %1642 = vst [vmem:[%s3572_s7 + $0x210] sm:$0xff] %v1551_v6  ;;  %v1327_v0 = vpop.permute.xlu0 %1326  ;;  %v1409_v34 = vmul.f32 %v1322_v47, %v3724_v46  ;;  %v1410_v50 = vmul.f32 %v1322_v47, %v3725_v18  ;;  %v1411_v61 = vmul.f32 %v1322_v47, %v3726_v17 }
 0x32c   :  { %1643 = vst [vmem:[%s3572_s7 + $0x218] sm:$0xff] %v1552_v49  ;;  %1644 = vst [vmem:[%s3572_s7 + $0x220] sm:$0xff] %v1553_v53  ;;  %v1412_v28 = vmul.f32 %v1322_v47, %v3727_v11  ;;  %v1413_v1 = vmul.f32 %v1327_v0, %v3728_v56  ;;  %v1414_v25 = vmul.f32 %v1327_v0, %v3729_v5 }
 0x32d   :  { %1645 = vst.msk [vmem:[%s3572_s7 + $0x228] sm:$0xff] %vm787_vm3, %v1554_v45  ;;  %v1473_v23 = vpop.permute.xlu1 %1472  ;;  %v1415_v26 = vmul.f32 %v1327_v0, %v3730_v57  ;;  %v1416_v30 = vmul.f32 %v1327_v0, %v3731_v29  ;;  %v1417_v38 = vmul.f32 %v1327_v0, %v3732_v54  ;;  %v1418_v8 = vmul.f32 %v1327_v0, %v3733_v22 }
 0x32e   :  { %v1555_v59 = vadd.f32 %v1473_v23, %v1399_v44  ;;  %v1556_v52 = vadd.f32 %v1473_v23, %v1400_v32  ;;  %v1557_v37 = vadd.f32 %v1473_v23, %v1401_v7  ;;  %v1558_v42 = vadd.f32 %v1473_v23, %v1402_v41  ;;  %v3734_v44 = vld [vmem:[#allocation54_spill] sm:$0xff] }
 0x32f   :  { %v1559_v63 = vadd.f32 %v1473_v23, %v1403_v48  ;;  %v1560_v16 = vadd.f32 %v1473_v23, %v1404_v27  ;;  %v1561_v33 = vadd.f32 %v1473_v23, %v1405_v35  ;;  %v1478_v36 = vpop.permute.xlu0 %1477  ;;  %v1419_v2 = vmul.f32 %v1327_v0, %v3734_v44 }
 0x330   :  { %1646 = vst [vmem:[%s3572_s7 + $0x230] sm:$0xff] %v1555_v59  ;;  %1647 = vst [vmem:[%s3572_s7 + $0x238] sm:$0xff] %v1556_v52  ;;  %v1562_v21 = vadd.f32 %v1478_v36, %v1406_v58  ;;  %v1563_v51 = vadd.f32 %v1478_v36, %v1407_v13  ;;  %v1564_v24 = vadd.f32 %v1478_v36, %v1408_v62 }
 0x331   :  { %1648 = vst [vmem:[%s3572_s7 + $0x240] sm:$0xff] %v1557_v37  ;;  %1649 = vst [vmem:[%s3572_s7 + $0x248] sm:$0xff] %v1558_v42  ;;  %v1565_v39 = vadd.f32 %v1478_v36, %v1409_v34  ;;  %v1566_v55 = vadd.f32 %v1478_v36, %v1410_v50  ;;  %v1567_v40 = vadd.f32 %v1478_v36, %v1411_v61  ;;  %v1483_v32 = vpop.permute.xlu1 %1482 }
 0x332   :  { %1650 = vst [vmem:[%s3572_s7 + $0x250] sm:$0xff] %v1559_v63  ;;  %1651 = vst [vmem:[%s3572_s7 + $0x258] sm:$0xff] %v1560_v16  ;;  %v1568_v43 = vadd.f32 %v1478_v36, %v1412_v28  ;;  %v1569_v3 = vadd.f32 %v1483_v32, %v1413_v1  ;;  %v1570_v4 = vadd.f32 %v1483_v32, %v1414_v25 }
 0x333   :  { %1652 = vst.msk [vmem:[%s3572_s7 + $0x260] sm:$0xff] %vm787_vm3, %v1561_v33  ;;  %1653 = vst [vmem:[%s3572_s7 + $0x268] sm:$0xff] %v1562_v21  ;;  %v1571_v31 = vadd.f32 %v1483_v32, %v1415_v26  ;;  %v1572_v60 = vadd.f32 %v1483_v32, %v1416_v30  ;;  %v1573_v6 = vadd.f32 %v1483_v32, %v1417_v38 }
 0x334   :  { %1654 = vst [vmem:[%s3572_s7 + $0x270] sm:$0xff] %v1563_v51  ;;  %1655 = vst [vmem:[%s3572_s7 + $0x278] sm:$0xff] %v1564_v24  ;;  %v1574_v12 = vadd.f32 %v1483_v32, %v1418_v8  ;;  %v1575_v7 = vadd.f32 %v1483_v32, %v1419_v2 }
 0x335   :  { %1656 = vst [vmem:[%s3572_s7 + $0x280] sm:$0xff] %v1565_v39  ;;  %1657 = vst [vmem:[%s3572_s7 + $0x288] sm:$0xff] %v1566_v55 }
 0x336   :  { %1658 = vst [vmem:[%s3572_s7 + $0x290] sm:$0xff] %v1567_v40  ;;  %1659 = vst.msk [vmem:[%s3572_s7 + $0x298] sm:$0xff] %vm787_vm3, %v1568_v43 }
 0x337   :  { %1660 = vst [vmem:[%s3572_s7 + $0x2a0] sm:$0xff] %v1569_v3  ;;  %1661 = vst [vmem:[%s3572_s7 + $0x2a8] sm:$0xff] %v1570_v4 }
 0x338   :  { %1662 = vst [vmem:[%s3572_s7 + $0x2b0] sm:$0xff] %v1571_v31  ;;  %1663 = vst [vmem:[%s3572_s7 + $0x2b8] sm:$0xff] %v1572_v60 }
 0x339   :  { %1664 = vst [vmem:[%s3572_s7 + $0x2c0] sm:$0xff] %v1573_v6  ;;  %1665 = vst [vmem:[%s3572_s7 + $0x2c8] sm:$0xff] %v1574_v12 }
 0x33a   :  { %1666 = vst.msk [vmem:[%s3572_s7 + $0x2d0] sm:$0xff] %vm787_vm3, %v1575_v7 }

</bundles_post_ra>
